<compile_context>
chip_gen: v5e
topology: v5e:2x2
jax: 0.10.0
libtpu: 0.0.40
codegen_flags: <defaults>
</compile_context>

<pallas_src>
import jax
import jax.numpy as jnp
from jax.experimental import pallas as pl
from jax.experimental.pallas import tpu as pltpu

IN_F = 784
H1_F = 512
H2_F = 300
H2_PAD = 384      # 300 -> 3 full 128-lane vregs
OUT_F = 20
OUT_PAD = 128     # lane-dense output width


def _round_up(n, m):
    return -(-n // m) * m


def _choose_tile(batch):
    """Batch tile: 256-aligned, <=1024 rows, >=2 grid steps for large batches
    (v7x megacore), never below 16 rows (bf16 sublane packing)."""
    if batch >= 512:
        return max(256, min(1024, _round_up(-(-batch // 2), 256)))
    return max(16, _round_up(batch, 16))


def mlp_kernel(x_ref, w1_ref, b1_ref, w2_ref, b2_ref, w3_ref, b3_ref, o_ref):
    # One (TB, 784) f32 batch tile per grid step; bf16 weights stay VMEM-resident.
    x = x_ref[...].astype(jnp.bfloat16)

    # Layer 1: Linear(784, 512) + ReLU   (bf16 MXU, f32 accumulate / bias)
    h1 = jnp.dot(x, w1_ref[...], preferred_element_type=jnp.float32) + b1_ref[...]
    h1 = jnp.maximum(h1, 0.0)

    # Layer 2: Linear(512, 300 padded to 384) + Sigmoid
    h2 = jnp.dot(h1.astype(jnp.bfloat16), w2_ref[...],
                 preferred_element_type=jnp.float32) + b2_ref[...]
    # sigmoid(x) = 0.5 * tanh(x/2) + 0.5  -> single EUP transcendental, exact.
    s2 = 0.5 * jnp.tanh(0.5 * h2) + 0.5

    # Layer 3: Linear(384-padded, 128-padded 20); padded w3 rows / b3 lanes are
    # zero, so the padded sigmoid columns (=0.5) contribute nothing.
    o = jnp.dot(s2.astype(jnp.bfloat16), w3_ref[...],
                preferred_element_type=jnp.float32) + b3_ref[...]
    o_ref[...] = o


def prepare_params(params):
    """One-time setup: (in, out) weights padded (300->384 hidden, 20->128 out),
    matmul weights cast to bf16, biases kept f32."""
    w1, b1, w2, b2, w3, b3 = params
    w2p = jnp.pad(w2, ((0, 0), (0, H2_PAD - H2_F)))
    b2p = jnp.pad(b2, ((0, 0), (0, H2_PAD - H2_F)))
    w3p = jnp.pad(w3, ((0, H2_PAD - H2_F), (0, OUT_PAD - OUT_F)))
    b3p = jnp.pad(b3, ((0, 0), (0, OUT_PAD - OUT_F)))
    return (w1.astype(jnp.bfloat16), b1.astype(jnp.float32),
            w2p.astype(jnp.bfloat16), b2p.astype(jnp.float32),
            w3p.astype(jnp.bfloat16), b3p.astype(jnp.float32))


def sequential_model_forward(x, prepared_params):
    """x: (B, ...) with prod(...) == 784, or (B, 784). Returns (B, 20) f32 logits."""
    if x.ndim > 2:
        x = x.reshape(x.shape[0], -1)                         # nn.Flatten
    B, F = x.shape
    assert F == IN_F
    x = x.astype(jnp.float32)                                 # bf16 cast happens in-kernel

    w1, b1, w2, b2, w3, b3 = prepared_params

    TB = _choose_tile(B)
    nsteps = pl.cdiv(B, TB)
    Bp = B
    if B < TB:
        # Tiny batches only: pad rows so the single block matches the array.
        Bp = TB
        x = jnp.pad(x, ((0, TB - B), (0, 0)))
    # For B >= TB the ragged last tile is handled by the cdiv grid: rows past B
    # are never written back, so no wrapper-side padding copy is needed.

    const = lambda i: (0, 0)                                  # weights stay resident
    out = pl.pallas_call(
        mlp_kernel,
        out_shape=jax.ShapeDtypeStruct((Bp, OUT_PAD), jnp.float32),
        grid=(nsteps,),
        in_specs=[
            pl.BlockSpec((TB, IN_F), lambda i: (i, 0)),       # x: streamed per tile
            pl.BlockSpec((IN_F, H1_F), const),                # w1 (VMEM-resident)
            pl.BlockSpec((1, H1_F), const),                   # b1
            pl.BlockSpec((H1_F, H2_PAD), const),              # w2
            pl.BlockSpec((1, H2_PAD), const),                 # b2
            pl.BlockSpec((H2_PAD, OUT_PAD), const),           # w3
            pl.BlockSpec((1, OUT_PAD), const),                # b3
        ],
        out_specs=pl.BlockSpec((TB, OUT_PAD), lambda i: (i, 0)),
        compiler_params=pltpu.CompilerParams(
            dimension_semantics=("parallel",),                # v7x: shard batch over 2 TCs
            vmem_limit_bytes=32 * 1024 * 1024,                # TB=1024 fits under v5e default
        ),
    )(x, w1, b1, w2, b2, w3, b3)

    return out[:B, :OUT_F]


def init_params(key):
    """Deterministic init mirroring nn.Linear(784,512), (512,300), (300,20).
    Weights stored (in, out) for x @ W; biases (1, out); all f32."""
    ks = jax.random.split(key, 6)

    def linear(kw, kb, fan_in, fan_out):
        bound = 1.0 / jnp.sqrt(fan_in)
        w = jax.random.uniform(kw, (fan_in, fan_out), jnp.float32, -bound, bound)
        b = jax.random.uniform(kb, (1, fan_out), jnp.float32, -bound, bound)
        return w, b

    w1, b1 = linear(ks[0], ks[1], IN_F, H1_F)
    w2, b2 = linear(ks[2], ks[3], H1_F, H2_F)
    w3, b3 = linear(ks[4], ks[5], H2_F, OUT_F)
    return (w1, b1, w2, b2, w3, b3)


if __name__ == "__main__":
    key = jax.random.PRNGKey(0)
    k_param, k_x = jax.random.split(key)

    params = init_params(k_param)
    prepared = prepare_params(params)                         # one-time pad + bf16 cast

    # Small NCHW-style input whose flattened size is 784 (1x28x28 image).
    x = jax.random.normal(k_x, (2, 1, 28, 28), dtype=jnp.float32)

    logits = sequential_model_forward(x, prepared)
    logits = jax.block_until_ready(logits)

    # Sanity check vs. plain-JAX f32 reference (tolerance covers bf16 MXU inputs;
    # accumulation is f32 and the sigmoid is exact).
    w1, b1, w2, b2, w3, b3 = params
    xf = x.reshape(x.shape[0], -1)
    h = jnp.maximum(xf @ w1 + b1, 0.0)
    h = jax.nn.sigmoid(h @ w2 + b2)
    ref = h @ w3 + b3
    assert logits.shape == (2, OUT_F)
    assert jnp.allclose(logits, ref, atol=3e-2, rtol=3e-2)

    print("KERNEL_OK")
</pallas_src>

<mosaic_0001>
module attributes {stable_mosaic.version = 11 : i64} {
  func.func @mlp_kernel(%arg0: i32, %arg1: memref<16x784xf32, #tpu.memory_space<vmem>>, %arg2: memref<784x512xbf16, #tpu.memory_space<vmem>>, %arg3: memref<1x512xf32, #tpu.memory_space<vmem>>, %arg4: memref<512x384xbf16, #tpu.memory_space<vmem>>, %arg5: memref<1x384xf32, #tpu.memory_space<vmem>>, %arg6: memref<384x128xbf16, #tpu.memory_space<vmem>>, %arg7: memref<1x128xf32, #tpu.memory_space<vmem>>, %arg8: memref<16x128xf32, #tpu.memory_space<vmem>>) attributes {dimension_semantics = [#tpu.dimension_semantics<parallel>], iteration_bounds = array<i64: 1>, scalar_prefetch = 0 : i64, scratch_operands = 0 : i64, tpu.core_type = #tpu.core_type<tc>, window_params = [{transform_indices = @transform_0, window_bounds = array<i64: 16, 784>}, {pipeline_mode = #tpu.pipeline_mode<synchronous>, transform_indices = @transform_1, window_bounds = array<i64: 784, 512>}, {pipeline_mode = #tpu.pipeline_mode<synchronous>, transform_indices = @transform_2, window_bounds = array<i64: 1, 512>}, {pipeline_mode = #tpu.pipeline_mode<synchronous>, transform_indices = @transform_3, window_bounds = array<i64: 512, 384>}, {pipeline_mode = #tpu.pipeline_mode<synchronous>, transform_indices = @transform_4, window_bounds = array<i64: 1, 384>}, {pipeline_mode = #tpu.pipeline_mode<synchronous>, transform_indices = @transform_5, window_bounds = array<i64: 384, 128>}, {pipeline_mode = #tpu.pipeline_mode<synchronous>, transform_indices = @transform_6, window_bounds = array<i64: 1, 128>}, {transform_indices = @transform_7, window_bounds = array<i64: 16, 128>}]} {
    %c0 = arith.constant 0 : index
    %c0_0 = arith.constant 0 : index
    %0 = vector.load %arg1[%c0, %c0_0] : memref<16x784xf32, #tpu.memory_space<vmem>>, vector<16x784xf32>
    %1 = arith.truncf %0 : vector<16x784xf32> to vector<16x784xbf16>
    %c0_1 = arith.constant 0 : index
    %c0_2 = arith.constant 0 : index
    %2 = vector.load %arg2[%c0_1, %c0_2] : memref<784x512xbf16, #tpu.memory_space<vmem>>, vector<784x512xbf16>
    %cst = arith.constant dense<0.000000e+00> : vector<16x512xf32>
    %3 = tpu.matmul %1, %2, %cst {dimension_numbers = #tpu.dot_dimension_numbers<[1], [0], [0], [1], [0, 0, 1, 1], [], []>} : vector<16x784xbf16>, vector<784x512xbf16>, vector<16x512xf32> -> vector<16x512xf32>
    %c0_3 = arith.constant 0 : index
    %c0_4 = arith.constant 0 : index
    %4 = vector.load %arg3[%c0_3, %c0_4] : memref<1x512xf32, #tpu.memory_space<vmem>>, vector<1x512xf32>
    %5 = vector.broadcast %4 : vector<1x512xf32> to vector<16x512xf32>
    %6 = arith.addf %3, %5 : vector<16x512xf32>
    %cst_5 = arith.constant 0.000000e+00 : f32
    %7 = vector.broadcast %cst_5 : f32 to vector<16x512xf32>
    %8 = arith.maximumf %6, %7 : vector<16x512xf32>
    %9 = arith.truncf %8 : vector<16x512xf32> to vector<16x512xbf16>
    %c0_6 = arith.constant 0 : index
    %c0_7 = arith.constant 0 : index
    %10 = vector.load %arg4[%c0_6, %c0_7] : memref<512x384xbf16, #tpu.memory_space<vmem>>, vector<512x384xbf16>
    %cst_8 = arith.constant dense<0.000000e+00> : vector<16x384xf32>
    %11 = tpu.matmul %9, %10, %cst_8 {dimension_numbers = #tpu.dot_dimension_numbers<[1], [0], [0], [1], [0, 0, 1, 1], [], []>} : vector<16x512xbf16>, vector<512x384xbf16>, vector<16x384xf32> -> vector<16x384xf32>
    %c0_9 = arith.constant 0 : index
    %c0_10 = arith.constant 0 : index
    %12 = vector.load %arg5[%c0_9, %c0_10] : memref<1x384xf32, #tpu.memory_space<vmem>>, vector<1x384xf32>
    %13 = vector.broadcast %12 : vector<1x384xf32> to vector<16x384xf32>
    %14 = arith.addf %11, %13 : vector<16x384xf32>
    %cst_11 = arith.constant 5.000000e-01 : f32
    %15 = vector.broadcast %cst_11 : f32 to vector<16x384xf32>
    %16 = arith.mulf %15, %14 : vector<16x384xf32>
    %17 = math.tanh %16 : vector<16x384xf32>
    %cst_12 = arith.constant 5.000000e-01 : f32
    %18 = vector.broadcast %cst_12 : f32 to vector<16x384xf32>
    %19 = arith.mulf %18, %17 : vector<16x384xf32>
    %cst_13 = arith.constant 5.000000e-01 : f32
    %20 = vector.broadcast %cst_13 : f32 to vector<16x384xf32>
    %21 = arith.addf %19, %20 : vector<16x384xf32>
    %22 = arith.truncf %21 : vector<16x384xf32> to vector<16x384xbf16>
    %c0_14 = arith.constant 0 : index
    %c0_15 = arith.constant 0 : index
    %23 = vector.load %arg6[%c0_14, %c0_15] : memref<384x128xbf16, #tpu.memory_space<vmem>>, vector<384x128xbf16>
    %cst_16 = arith.constant dense<0.000000e+00> : vector<16x128xf32>
    %24 = tpu.matmul %22, %23, %cst_16 {dimension_numbers = #tpu.dot_dimension_numbers<[1], [0], [0], [1], [0, 0, 1, 1], [], []>} : vector<16x384xbf16>, vector<384x128xbf16>, vector<16x128xf32> -> vector<16x128xf32>
    %c0_17 = arith.constant 0 : index
    %c0_18 = arith.constant 0 : index
    %25 = vector.load %arg7[%c0_17, %c0_18] : memref<1x128xf32, #tpu.memory_space<vmem>>, vector<1x128xf32>
    %26 = vector.broadcast %25 : vector<1x128xf32> to vector<16x128xf32>
    %27 = arith.addf %24, %26 : vector<16x128xf32>
    %c0_19 = arith.constant 0 : index
    %c0_20 = arith.constant 0 : index
    %28 = vector.load %arg8[%c0_19, %c0_20] : memref<16x128xf32, #tpu.memory_space<vmem>>, vector<16x128xf32>
    tpu.vector_store %arg8[%c0_19, %c0_20], %27 {strides = array<i32>} : memref<16x128xf32, #tpu.memory_space<vmem>>, vector<16x128xf32>,
    return
  }
  func.func @transform_0(%arg0: i32) -> (i32, i32) {
    %c0_i32 = arith.constant 0 : i32
    %c0_i32_0 = arith.constant 0 : i32
    return %arg0, %c0_i32 : i32, i32
  }
  func.func @transform_1(%arg0: i32) -> (i32, i32) {
    %c0_i32 = arith.constant 0 : i32
    %c0_i32_0 = arith.constant 0 : i32
    %c0_i32_1 = arith.constant 0 : i32
    return %c0_i32, %c0_i32_0 : i32, i32
  }
  func.func @transform_2(%arg0: i32) -> (i32, i32) {
    %c0_i32 = arith.constant 0 : i32
    %c0_i32_0 = arith.constant 0 : i32
    %c0_i32_1 = arith.constant 0 : i32
    return %c0_i32, %c0_i32_0 : i32, i32
  }
  func.func @transform_3(%arg0: i32) -> (i32, i32) {
    %c0_i32 = arith.constant 0 : i32
    %c0_i32_0 = arith.constant 0 : i32
    %c0_i32_1 = arith.constant 0 : i32
    return %c0_i32, %c0_i32_0 : i32, i32
  }
  func.func @transform_4(%arg0: i32) -> (i32, i32) {
    %c0_i32 = arith.constant 0 : i32
    %c0_i32_0 = arith.constant 0 : i32
    %c0_i32_1 = arith.constant 0 : i32
    return %c0_i32, %c0_i32_0 : i32, i32
  }
  func.func @transform_5(%arg0: i32) -> (i32, i32) {
    %c0_i32 = arith.constant 0 : i32
    %c0_i32_0 = arith.constant 0 : i32
    %c0_i32_1 = arith.constant 0 : i32
    return %c0_i32, %c0_i32_0 : i32, i32
  }
  func.func @transform_6(%arg0: i32) -> (i32, i32) {
    %c0_i32 = arith.constant 0 : i32
    %c0_i32_0 = arith.constant 0 : i32
    %c0_i32_1 = arith.constant 0 : i32
    return %c0_i32, %c0_i32_0 : i32, i32
  }
  func.func @transform_7(%arg0: i32) -> (i32, i32) {
    %c0_i32 = arith.constant 0 : i32
    %c0_i32_0 = arith.constant 0 : i32
    return %arg0, %c0_i32 : i32, i32
  }
}

</mosaic_0001>

<bundles_post_ra>
// kernel: tpu_custom_call.1
= control target key start
LH: loop header
LB: loop body
LE: loop exit
PB: predicated region body
PF: predicated region fallthrough
CT: control target
= control target key end

     0   :  { %12 = vsyncpa [#allocation3], 0  ;;  %s4743_s0 = inlined_call_operand.hbm [shape: f32[16,784], index: 0, kind: input, shape index: {}]   ;;  %s4744_s1 = inlined_call_operand.hbm [shape: bf16[784,512], index: 1, kind: input, shape index: {}]   ;;  %s4745_s2 = inlined_call_operand.hbm [shape: f32[1,512], index: 2, kind: input, shape index: {}]   ;;  %s4746_s3 = inlined_call_operand.hbm [shape: bf16[512,384], index: 3, kind: input, shape index: {}]   ;;  %s4747_s4 = inlined_call_operand.vmem [shape: f32[1,384], index: 4, kind: input, shape index: {}]   ;;  %s4748_s5 = inlined_call_operand.hbm [shape: bf16[384,128], index: 5, kind: input, shape index: {}]   ;;  %s4749_s6 = inlined_call_operand.vmem [shape: f32[1,128], index: 6, kind: input, shape index: {}]   ;;  %s4750_s7 = inlined_call_operand.hbm [shape: f32[16,128], index: 7, kind: output, shape index: {}]  }
   0x1   :  { %13 = vsyncpa [#allocation6], 0 }
   0x2   :  { %14 = vsyncpa [#allocation9], 0  ;;  %s33_s26 = sshll.u32 %s4744_s1, 4  ;;  %s34_s26 = int_to_ptr.hbm [resolvable:$true] %s33_s26 }
   0x3   :  { %15 = vsyncpa [#allocation4], 0  ;;  %s4588_s27 = smov [#allocation5]   ;;  %s57_s8 = sshll.u32 %s4746_s3, 4  ;;  %s58_s8 = int_to_ptr.hbm [resolvable:$true] %s57_s8 }
   0x4   :  { %s35_s28 = sshll.u32 %s4588_s27, 4  ;;  %s4589_s9 = smov 256   ;;  %s36_s28 = int_to_ptr.vmem [resolvable:$true] %s35_s28 }
   0x5   :  { %s4590_s10 = smov 16   ;;  %s4591_s11 = smov [#allocation8]  }
   0x6   :  { %41 = dma.hbm_to_vmem [thread:$0]  %s34_s26, 25088, %s36_s28, [#allocation6], %s4589_s9, %s4589_s9, %s4590_s10  }
   0x7   :  { %s59_s12 = sshll.u32 %s4591_s11, 4  ;;  %s4592_s13 = smov 192   ;;  %s60_s12 = int_to_ptr.vmem [resolvable:$true] %s59_s12 }
   0x8   :  { %s4593_s14 = smov 12   ;;  %s20_s16 = sshll.u32 %s4743_s0, 4  ;;  %s21_s16 = int_to_ptr.hbm [resolvable:$true] %s20_s16 }
   0x9   :  { %65 = dma.hbm_to_vmem [thread:$0]  %s58_s8, 12288, %s60_s12, [#allocation9], %s4592_s13, %s4592_s13, %s4593_s14  }
   0xa   :  { %s4594_s17 = smov [#allocation2]   ;;  %s47_s20 = sshll.u32 %s4745_s2, 4  ;;  %s48_s20 = int_to_ptr.hbm [resolvable:$true] %s47_s20 }
   0xb   :  { %s22_s18 = sshll.u32 %s4594_s17, 4  ;;  %s4595_s21 = smov 896   ;;  %s23_s18 = int_to_ptr.vmem [resolvable:$true] %s22_s18 }
   0xc   :  { %s4596_s22 = smov 56   ;;  %s4597_s23 = smov [#allocation7]  }
   0xd   :  { %28 = dma.hbm_to_vmem [thread:$0]  %s21_s16, 1792, %s23_s18, [#allocation3], %s4595_s21, %s4595_s21, %s4596_s22  }
   0xe   :  { %s49_s24 = sshll.u32 %s4597_s23, 4  ;;  %s72_s27 = sshll.u32 %s4748_s5, 4  ;;  %s50_s24 = int_to_ptr.vmem [resolvable:$true] %s49_s24  ;;  %s73_s27 = int_to_ptr.hbm [resolvable:$true] %s72_s27 }
   0xf   :  { %52 = dma.hbm_to_vmem [thread:$0]  %s48_s20, 64, %s50_s24, [#allocation6]  }
  0x10   :  { %s4598_s0 = smov [#allocation10]   ;;  %s4599_s29 = smov 64  }
  0x11   :  { %s74_s28 = sshll.u32 %s4598_s0, 4  ;;  %s4600_s30 = smov 4   ;;  %s75_s28 = int_to_ptr.vmem [resolvable:$true] %s74_s28 }
  0x12   :  { %80 = dma.hbm_to_vmem [thread:$0]  %s73_s27, 3072, %s75_s28, [#allocation9], %s4599_s29, %s4599_s29, %s4600_s30  }
  0x13   :  { %4580 = dma.done.wait [#allocation3], 1792  }
  0x14   :  { %4581 = vsyncadd [#allocation3], 4294965504 }
  0x15   :  { %4582 = dma.done.wait [#allocation6], 25152  }
  0x16   :  { %4583 = vsyncadd [#allocation6], 4294942144 }
  0x17   :  { %4584 = dma.done.wait [#allocation9], 15360  }
  0x18   :  { %4585 = vsyncadd [#allocation9], 4294951936  ;;  %v2937_v0 = vld [vmem:[#allocation5 + $0xe0] sm:$0xf]  ;;  %v4121_v1 = vld [vmem:[#allocation5 + $0xec] sm:$0xf0] }
  0x19   :  { %v3065_v2 = vld [vmem:[#allocation5 + $0x1e0] sm:$0xf]  ;;  %v2938_v3 = vor.u32 %v4121_v1, %v2937_v0  ;;  %v4153_v4 = vld [vmem:[#allocation5 + $0x1ec] sm:$0xf0]  ;;  %vm1311_vm0 = vcmask 130048   ;;  %s4601_s9 = smov [#allocation11]  }
  0x1a   :  { %v3193_v5 = vld [vmem:[#allocation5 + $0x2e0] sm:$0xf]  ;;  %v4185_v6 = vld [vmem:[#allocation5 + $0x2ec] sm:$0xf0]  ;;  %v3066_v7 = vor.u32 %v4153_v4, %v3065_v2  ;;  %s2806_s10 = sshll.u32 %s4601_s9, 4  ;;  %s2808_s13 = sshll.u32 %s4750_s7, 4  ;;  %s2807_s10 = int_to_ptr.vmem [resolvable:$true] %s2806_s10  ;;  %s2809_s13 = int_to_ptr.hbm [resolvable:$true] %s2808_s13 }
  0x1b   :  { %v3194_v8 = vor.u32 %v4185_v6, %v3193_v5  ;;  %v3321_v9 = vld [vmem:[#allocation5 + $0x3e0] sm:$0xf]  ;;  %v4217_v10 = vld [vmem:[#allocation5 + $0x3ec] sm:$0xf0]  ;;  %1315 = vmatpush.bf16.msra.mxu0 %v2938_v3  ;;  %s4603_s14 = smov 8  }
  0x1c   :  { %v2921_v11 = vld [vmem:[#allocation5 + $0xc0] sm:$0xf]  ;;  %v3322_v12 = vor.u32 %v4217_v10, %v3321_v9  ;;  %v4117_v13 = vld [vmem:[#allocation5 + $0xcc] sm:$0xf0]  ;;  %1329 = vmatpush.bf16.msra.mxu1 %v3066_v7 }
  0x1d   :  { %v3049_v14 = vld [vmem:[#allocation5 + $0x1c0] sm:$0xf]  ;;  %v4149_v15 = vld [vmem:[#allocation5 + $0x1cc] sm:$0xf0]  ;;  %1343 = vmatpush.bf16.msra.mxu2 %v3194_v8  ;;  %v2922_v16 = vor.u32 %v4117_v13, %v2921_v11 }
  0x1e   :  { %v3050_v17 = vor.u32 %v4149_v15, %v3049_v14  ;;  %v3177_v18 = vld [vmem:[#allocation5 + $0x2c0] sm:$0xf]  ;;  %v4181_v19 = vld [vmem:[#allocation5 + $0x2cc] sm:$0xf0]  ;;  %1357 = vmatpush.bf16.msra.mxu3 %v3322_v12 }
  0x1f   :  { %v3305_v20 = vld [vmem:[#allocation5 + $0x3c0] sm:$0xf]  ;;  %v3178_v21 = vor.u32 %v4181_v19, %v3177_v18  ;;  %v4213_v22 = vld [vmem:[#allocation5 + $0x3cc] sm:$0xf0]  ;;  %1316 = vmatpush.bf16.msra.mxu0 %v2922_v16 }
  0x20   :  { %v2905_v23 = vld [vmem:[#allocation5 + $0xa0] sm:$0xf]  ;;  %v4113_v24 = vld [vmem:[#allocation5 + $0xac] sm:$0xf0]  ;;  %v3306_v25 = vor.u32 %v4213_v22, %v3305_v20  ;;  %1330 = vmatpush.bf16.msra.mxu1 %v3050_v17 }
  0x21   :  { %v3033_v26 = vld [vmem:[#allocation5 + $0x1a0] sm:$0xf]  ;;  %v4145_v27 = vld [vmem:[#allocation5 + $0x1ac] sm:$0xf0]  ;;  %v2906_v29 = vor.u32 %v4113_v24, %v2905_v23  ;;  %1344 = vmatpush.bf16.msra.mxu2 %v3178_v21 }
  0x22   :  { %v3161_v28 = vld [vmem:[#allocation5 + $0x2a0] sm:$0xf]  ;;  %v4177_v30 = vld [vmem:[#allocation5 + $0x2ac] sm:$0xf0]  ;;  %v3034_v33 = vor.u32 %v4145_v27, %v3033_v26  ;;  %1358 = vmatpush.bf16.msra.mxu3 %v3306_v25 }
  0x23   :  { %v3289_v31 = vld [vmem:[#allocation5 + $0x3a0] sm:$0xf]  ;;  %v4209_v32 = vld [vmem:[#allocation5 + $0x3ac] sm:$0xf0]  ;;  %v3162_v34 = vor.u32 %v4177_v30, %v3161_v28  ;;  %1317 = vmatpush.bf16.msra.mxu0 %v2906_v29 }
  0x24   :  { %v2889_v35 = vld [vmem:[#allocation5 + $0x80] sm:$0xf]  ;;  %v4109_v36 = vld [vmem:[#allocation5 + $0x8c] sm:$0xf0]  ;;  %v3290_v38 = vor.u32 %v4209_v32, %v3289_v31  ;;  %1331 = vmatpush.bf16.msra.mxu1 %v3034_v33  ;;  %v4119_v32 = vld [vmem:[#allocation5 + $0xe4] sm:$0xf] }
  0x25   :  { %v3017_v37 = vld [vmem:[#allocation5 + $0x180] sm:$0xf]  ;;  %v4141_v39 = vld [vmem:[#allocation5 + $0x18c] sm:$0xf0]  ;;  %v2890_v44 = vor.u32 %v4109_v36, %v2889_v35  ;;  %1345 = vmatpush.bf16.msra.mxu2 %v3162_v34  ;;  %v2939_v33 = vld [vmem:[#allocation5 + $0xf0] sm:$0xf0] }
  0x26   :  { %v3145_v40 = vld [vmem:[#allocation5 + $0x280] sm:$0xf]  ;;  %v4173_v41 = vld [vmem:[#allocation5 + $0x28c] sm:$0xf0]  ;;  %v3018_v45 = vor.u32 %v4141_v39, %v3017_v37  ;;  %1359 = vmatpush.bf16.msra.mxu3 %v3290_v38  ;;  %v113_v36 = vld [vmem:[#allocation2 + $0x48] sm:$0xff] }
  0x27   :  { %v3273_v42 = vld [vmem:[#allocation5 + $0x380] sm:$0xf]  ;;  %v4205_v43 = vld [vmem:[#allocation5 + $0x38c] sm:$0xf0]  ;;  %v3146_v46 = vor.u32 %v4173_v41, %v3145_v40  ;;  %1318 = vmatpush.bf16.msra.mxu0 %v2890_v44  ;;  %v4151_v41 = vld [vmem:[#allocation5 + $0x1e4] sm:$0xf] }
  0x28   :  { %v2873_v47 = vld [vmem:[#allocation5 + $0x60] sm:$0xf]  ;;  %v4105_v48 = vld [vmem:[#allocation5 + $0x6c] sm:$0xf0]  ;;  %v3274_v50 = vor.u32 %v4205_v43, %v3273_v42  ;;  %1332 = vmatpush.bf16.msra.mxu1 %v3018_v45  ;;  %v111_v43 = vld [vmem:[#allocation2 + $0x38] sm:$0xff] }
  0x29   :  { %v3001_v49 = vld [vmem:[#allocation5 + $0x160] sm:$0xf]  ;;  %v4137_v51 = vld [vmem:[#allocation5 + $0x16c] sm:$0xf0]  ;;  %v2874_v56 = vor.u32 %v4105_v48, %v2873_v47  ;;  %1346 = vmatpush.bf16.msra.mxu2 %v3146_v46  ;;  %v3067_v46 = vld [vmem:[#allocation5 + $0x1f0] sm:$0xf0] }
  0x2a   :  { %v3129_v52 = vld [vmem:[#allocation5 + $0x260] sm:$0xf]  ;;  %v4169_v53 = vld [vmem:[#allocation5 + $0x26c] sm:$0xf0]  ;;  %v3002_v57 = vor.u32 %v4137_v51, %v3001_v49  ;;  %1360 = vmatpush.bf16.msra.mxu3 %v3274_v50  ;;  %v107_v47 = vld [vmem:[#allocation2 + $0x18] sm:$0xff]  ;;  %v2942_v50 = vor.u32 %v4119_v32, %v2939_v33 }
  0x2b   :  { %v3257_v54 = vld [vmem:[#allocation5 + $0x360] sm:$0xf]  ;;  %v4201_v55 = vld [vmem:[#allocation5 + $0x36c] sm:$0xf0]  ;;  %v3130_v58 = vor.u32 %v4169_v53, %v3129_v52  ;;  %1319 = vmatpush.bf16.msra.mxu0 %v2874_v56 }
  0x2c   :  { %v2857_v59 = vld [vmem:[#allocation5 + $0x40] sm:$0xf]  ;;  %v4101_v60 = vld [vmem:[#allocation5 + $0x4c] sm:$0xf0]  ;;  %v3258_v62 = vor.u32 %v4201_v55, %v3257_v54  ;;  %1333 = vmatpush.bf16.msra.mxu1 %v3002_v57  ;;  %v4115_v57 = vld [vmem:[#allocation5 + $0xc4] sm:$0xf] }
  0x2d   :  { %v2985_v61 = vld [vmem:[#allocation5 + $0x140] sm:$0xf]  ;;  %v4133_v63 = vld [vmem:[#allocation5 + $0x14c] sm:$0xf0]  ;;  %v2858_v4 = vor.u32 %v4101_v60, %v2857_v59  ;;  %1347 = vmatpush.bf16.msra.mxu2 %v3130_v58  ;;  %v2923_v58 = vld [vmem:[#allocation5 + $0xd0] sm:$0xf0] }
  0x2e   :  { %v3113_v0 = vld [vmem:[#allocation5 + $0x240] sm:$0xf]  ;;  %v4165_v1 = vld [vmem:[#allocation5 + $0x24c] sm:$0xf0]  ;;  %v2986_v6 = vor.u32 %v4133_v63, %v2985_v61  ;;  %1361 = vmatpush.bf16.msra.mxu3 %v3258_v62  ;;  %v105_v61 = vld [vmem:[#allocation2 + $0x8] sm:$0xff]  ;;  %v3070_v63 = vor.u32 %v4151_v41, %v3067_v46 }
  0x2f   :  { %v3241_v2 = vld [vmem:[#allocation5 + $0x340] sm:$0xf]  ;;  %v4197_v3 = vld [vmem:[#allocation5 + $0x34c] sm:$0xf0]  ;;  %v3114_v7 = vor.u32 %v4165_v1, %v3113_v0  ;;  %1320 = vmatpush.bf16.msra.mxu0 %v2858_v4  ;;  %v4147_v1 = vld [vmem:[#allocation5 + $0x1c4] sm:$0xf]  ;;  %v2926_v4 = vor.u32 %v4115_v57, %v2923_v58 }
  0x30   :  { %v2841_v5 = vld [vmem:[#allocation5 + $0x20] sm:$0xf]  ;;  %v4097_v8 = vld [vmem:[#allocation5 + $0x2c] sm:$0xf0]  ;;  %v3242_v11 = vor.u32 %v4197_v3, %v3241_v2  ;;  %1334 = vmatpush.bf16.msra.mxu1 %v2986_v6  ;;  %v3051_v2 = vld [vmem:[#allocation5 + $0x1d0] sm:$0xf0] }
  0x31   :  { %v2969_v9 = vld [vmem:[#allocation5 + $0x120] sm:$0xf]  ;;  %v4129_v10 = vld [vmem:[#allocation5 + $0x12c] sm:$0xf0]  ;;  %v2842_v18 = vor.u32 %v4097_v8, %v2841_v5  ;;  %1348 = vmatpush.bf16.msra.mxu2 %v3114_v7  ;;  %v3003_v41 = vld [vmem:[#allocation5 + $0x170] sm:$0xf0] }
  0x32   :  { %v3097_v12 = vld [vmem:[#allocation5 + $0x220] sm:$0xf]  ;;  %v4161_v13 = vld [vmem:[#allocation5 + $0x22c] sm:$0xf0]  ;;  %v2970_v23 = vor.u32 %v4129_v10, %v2969_v9  ;;  %1362 = vmatpush.bf16.msra.mxu3 %v3242_v11  ;;  %v4111_v10 = vld [vmem:[#allocation5 + $0xa4] sm:$0xf] }
  0x33   :  { %v3225_v14 = vld [vmem:[#allocation5 + $0x320] sm:$0xf]  ;;  %v4193_v15 = vld [vmem:[#allocation5 + $0x32c] sm:$0xf0]  ;;  %v3098_v24 = vor.u32 %v4161_v13, %v3097_v12  ;;  %1321 = vmatpush.bf16.msra.mxu0 %v2842_v18  ;;  %v2907_v11 = vld [vmem:[#allocation5 + $0xb0] sm:$0xf0]  ;;  %v3054_v12 = vor.u32 %v4147_v1, %v3051_v2 }
  0x34   :  { %v2825_v16 = vld [vmem:[#allocation5] sm:$0xf]  ;;  %v4093_v17 = vld [vmem:[#allocation5 + $0xc] sm:$0xf0]  ;;  %v3226_v28 = vor.u32 %v4193_v15, %v3225_v14  ;;  %1335 = vmatpush.bf16.msra.mxu1 %v2970_v23  ;;  %v4143_v14 = vld [vmem:[#allocation5 + $0x1a4] sm:$0xf] }
  0x35   :  { %v2953_v19 = vld [vmem:[#allocation5 + $0x100] sm:$0xf]  ;;  %v4125_v20 = vld [vmem:[#allocation5 + $0x10c] sm:$0xf0]  ;;  %v2826_v35 = vor.u32 %v4093_v17, %v2825_v16  ;;  %1349 = vmatpush.bf16.msra.mxu2 %v3098_v24  ;;  %v3035_v15 = vld [vmem:[#allocation5 + $0x1b0] sm:$0xf0]  ;;  %v2910_v17 = vor.u32 %v4111_v10, %v2907_v11 }
  0x36   :  { %v3081_v21 = vld [vmem:[#allocation5 + $0x200] sm:$0xf]  ;;  %v4157_v22 = vld [vmem:[#allocation5 + $0x20c] sm:$0xf0]  ;;  %v2954_v39 = vor.u32 %v4125_v20, %v2953_v19  ;;  %1363 = vmatpush.bf16.msra.mxu3 %v3226_v28  ;;  %v2891_v23 = vld [vmem:[#allocation5 + $0x90] sm:$0xf0]  ;;  %v3038_v24 = vor.u32 %v4143_v14, %v3035_v15 }
  0x37   :  { %v3209_v25 = vld [vmem:[#allocation5 + $0x300] sm:$0xf]  ;;  %v4189_v26 = vld [vmem:[#allocation5 + $0x30c] sm:$0xf0]  ;;  %v3082_v40 = vor.u32 %v4157_v22, %v3081_v21  ;;  %1322 = vmatpush.bf16.msra.mxu0 %v2826_v35  ;;  %v4107_v22 = vld [vmem:[#allocation5 + $0x84] sm:$0xf] }
  0x38   :  { %v3449_v27 = vld [vmem:[#allocation5 + $0x4e0] sm:$0xf]  ;;  %v4249_v29 = vld [vmem:[#allocation5 + $0x4ec] sm:$0xf0]  ;;  %v3210_v44 = vor.u32 %v4189_v26, %v3209_v25  ;;  %1336 = vmatpush.bf16.msra.mxu1 %v2954_v39  ;;  %v4139_v26 = vld [vmem:[#allocation5 + $0x184] sm:$0xf] }
  0x39   :  { %v3577_v30 = vld [vmem:[#allocation5 + $0x5e0] sm:$0xf]  ;;  %v4281_v31 = vld [vmem:[#allocation5 + $0x5ec] sm:$0xf0]  ;;  %v3450_v45 = vor.u32 %v4249_v29, %v3449_v27  ;;  %1350 = vmatpush.bf16.msra.mxu2 %v3082_v40  ;;  %v3019_v27 = vld [vmem:[#allocation5 + $0x190] sm:$0xf0]  ;;  %v2894_v29 = vor.u32 %v4107_v22, %v2891_v23 }
  0x3a   :  { %v106_v34 = vld [vmem:[#allocation2 + $0x10] sm:$0xff]  ;;  %v4285_v38 = vld [vmem:[#allocation5 + $0x60c] sm:$0xf0]  ;;  %v3578_v49 = vor.u32 %v4281_v31, %v3577_v30  ;;  %1364 = vmatpush.bf16.msra.mxu3 %v3210_v44  ;;  %v2875_v35 = vld [vmem:[#allocation5 + $0x70] sm:$0xf0] }
  0x3b   :  { %v3593_v37 = vld [vmem:[#allocation5 + $0x600] sm:$0xf]  ;;  %v104_v42 = vld [vmem:[#allocation2] sm:$0xff]  ;;  %v4659_v54 = vpack.c.bf16 %v113_v36, %v106_v34  ;;  %1371 = vmatpush.bf16.msrb.mxu0 %v3450_v45  ;;  %v4103_v34 = vld [vmem:[#allocation5 + $0x64] sm:$0xf] }
  0x3c   :  { %v114_v48 = vld [vmem:[#allocation2 + $0x50] sm:$0xff]  ;;  %v4245_v52 = vld [vmem:[#allocation5 + $0x4cc] sm:$0xf0]  ;;  %v4661_v55 = vpack.c.bf16 %v111_v43, %v104_v42  ;;  %v3594_v59 = vor.u32 %v4285_v38, %v3593_v37  ;;  %1385 = vmatpush.bf16.msrb.mxu1 %v3578_v49  ;;  %v117_v37 = vld [vmem:[#allocation2 + $0x68] sm:$0xff]  ;;  %v3022_v38 = vor.u32 %v4139_v26, %v3019_v27  ;;  %v2878_v43 = vor.u32 %v4103_v34, %v2875_v35 }
  0x3d   :  { %v3433_v51 = vld [vmem:[#allocation5 + $0x4c0] sm:$0xf]  ;;  %v4277_v56 = vld [vmem:[#allocation5 + $0x5cc] sm:$0xf0]  ;;  %v4663_v60 = vpack.c.bf16 %v114_v48, %v107_v47  ;;  %1351 = vmatmul.bf16.vlgmr.msra.gmra.mxu2 %v4659_v54  ;;  %v4135_v40 = vld [vmem:[#allocation5 + $0x164] sm:$0xf] }
  0x3e   :  { %v3561_v53 = vld [vmem:[#allocation5 + $0x5c0] sm:$0xf]  ;;  %v112_v62 = vld [vmem:[#allocation2 + $0x40] sm:$0xff]  ;;  %v3434_v0 = vor.u32 %v4245_v52, %v3433_v51  ;;  %1413 = vmatpush.bf16.msrb.mxu3 %v2942_v50  ;;  %1323 = vmatmul.bf16.vlgmr.msra.gmra.mxu0 %v4661_v55  ;;  %v4099_v48 = vld [vmem:[#allocation5 + $0x44] sm:$0xf]  ;;  %v3006_v51 = vor.u32 %v4135_v40, %v3003_v41 }
  0x3f   :  { %v3562_v3 = vor.u32 %v4277_v56, %v3561_v53  ;;  %v3417_v5 = vld [vmem:[#allocation5 + $0x4a0] sm:$0xf]  ;;  %v4241_v6 = vld [vmem:[#allocation5 + $0x4ac] sm:$0xf0]  ;;  %v4667_v8 = vpack.c.bf16 %v112_v62, %v105_v61  ;;  %1406 = vmatpush.bf16.msrb.mxu2 %v3594_v59  ;;  %1365 = vmatmul.bf16.vlgmr.msra.gmra.mxu3 %v4663_v60  ;;  %v2859_v49 = vld [vmem:[#allocation5 + $0x50] sm:$0xf0] }
  0x40   :  { %v3545_v7 = vld [vmem:[#allocation5 + $0x5a0] sm:$0xf]  ;;  %v4273_v9 = vld [vmem:[#allocation5 + $0x5ac] sm:$0xf0]  ;;  %1372 = vmatpush.bf16.msrb.mxu0 %v3434_v0  ;;  %v3418_v13 = vor.u32 %v4241_v6, %v3417_v5  ;;  %v4131_v53 = vld [vmem:[#allocation5 + $0x144] sm:$0xf]  ;;  %v2862_v58 = vor.u32 %v4099_v48, %v2859_v49 }
  0x41   :  { %1386 = vmatpush.bf16.msrb.mxu1 %v3562_v3  ;;  %v3546_v16 = vor.u32 %v4273_v9, %v3545_v7  ;;  %v3401_v18 = vld [vmem:[#allocation5 + $0x480] sm:$0xf]  ;;  %v4237_v19 = vld [vmem:[#allocation5 + $0x48c] sm:$0xf0]  ;;  %v2987_v56 = vld [vmem:[#allocation5 + $0x150] sm:$0xf0] }
  0x42   :  { %1414 = vmatpush.bf16.msrb.mxu3 %v2926_v4  ;;  %v3529_v20 = vld [vmem:[#allocation5 + $0x580] sm:$0xf]  ;;  %1337 = vmatmul.bf16.vlgmr.msra.gmra.mxu1 %v4667_v8  ;;  %v4269_v21 = vld [vmem:[#allocation5 + $0x58c] sm:$0xf0]  ;;  %v3402_v25 = vor.u32 %v4237_v19, %v3401_v18  ;;  %v4095_v0 = vld [vmem:[#allocation5 + $0x24] sm:$0xf]  ;;  %v2990_v4 = vor.u32 %v4131_v53, %v2987_v56 }
  0x43   :  { %1427 = vmatpush.bf16.msra.mxu2 %v3070_v63  ;;  %v3530_v28 = vor.u32 %v4269_v21, %v3529_v20  ;;  %v3385_v30 = vld [vmem:[#allocation5 + $0x460] sm:$0xf]  ;;  %v4233_v31 = vld [vmem:[#allocation5 + $0x46c] sm:$0xf0]  ;;  %v2843_v1 = vld [vmem:[#allocation5 + $0x30] sm:$0xf0] }
  0x44   :  { %1373 = vmatpush.bf16.msrb.mxu0 %v3418_v13  ;;  %v3513_v32 = vld [vmem:[#allocation5 + $0x560] sm:$0xf]  ;;  %v4265_v33 = vld [vmem:[#allocation5 + $0x56c] sm:$0xf0]  ;;  %v3386_v39 = vor.u32 %v4233_v31, %v3385_v30  ;;  %v4127_v2 = vld [vmem:[#allocation5 + $0x124] sm:$0xf]  ;;  %v2846_v11 = vor.u32 %v4095_v0, %v2843_v1 }
  0x45   :  { %1387 = vmatpush.bf16.msrb.mxu1 %v3546_v16  ;;  %v110_v36 = vld [vmem:[#allocation2 + $0x30] sm:$0xff]  ;;  %v3514_v42 = vor.u32 %v4265_v33, %v3513_v32  ;;  %v4229_v45 = vld [vmem:[#allocation5 + $0x44c] sm:$0xf0]  ;;  %v2971_v3 = vld [vmem:[#allocation5 + $0x130] sm:$0xf0] }
  0x46   :  { %1415 = vmatpush.bf16.msrb.mxu3 %v2910_v17  ;;  %v3369_v44 = vld [vmem:[#allocation5 + $0x440] sm:$0xf]  ;;  %v4261_v47 = vld [vmem:[#allocation5 + $0x54c] sm:$0xf0]  ;;  %v4671_v50 = vpack.c.bf16 %v117_v37, %v110_v36  ;;  %v4091_v13 = vld [vmem:[#allocation5 + $0x4] sm:$0xf]  ;;  %v2974_v21 = vor.u32 %v4127_v2, %v2971_v3 }
  0x47   :  { %1428 = vmatpush.bf16.msra.mxu2 %v3054_v12  ;;  %v3497_v46 = vld [vmem:[#allocation5 + $0x540] sm:$0xf]  ;;  %v3370_v52 = vor.u32 %v4229_v45, %v3369_v44  ;;  %v4225_v61 = vld [vmem:[#allocation5 + $0x42c] sm:$0xf0]  ;;  %v2827_v14 = vld [vmem:[#allocation5 + $0x10] sm:$0xf0] }
  0x48   :  { %1374 = vmatpush.bf16.msrb.mxu0 %v3402_v25  ;;  %v3498_v57 = vor.u32 %v4261_v47, %v3497_v46  ;;  %v3353_v59 = vld [vmem:[#allocation5 + $0x420] sm:$0xf]  ;;  %v4257_v63 = vld [vmem:[#allocation5 + $0x52c] sm:$0xf0]  ;;  %v4183_v15 = vld [vmem:[#allocation5 + $0x2e4] sm:$0xf]  ;;  %v2830_v27 = vor.u32 %v4091_v13, %v2827_v14 }
  0x49   :  { %1388 = vmatpush.bf16.msrb.mxu1 %v3530_v28  ;;  %v3481_v62 = vld [vmem:[#allocation5 + $0x520] sm:$0xf]  ;;  %v3354_v5 = vor.u32 %v4225_v61, %v3353_v59  ;;  %v4221_v7 = vld [vmem:[#allocation5 + $0x40c] sm:$0xf0]  ;;  %v3195_v16 = vld [vmem:[#allocation5 + $0x2f0] sm:$0xf0] }
  0x4a   :  { %1416 = vmatpush.bf16.msrb.mxu3 %v2894_v29  ;;  %v3337_v6 = vld [vmem:[#allocation5 + $0x400] sm:$0xf]  ;;  %v3482_v10 = vor.u32 %v4257_v63, %v3481_v62  ;;  %v4253_v12 = vld [vmem:[#allocation5 + $0x50c] sm:$0xf0]  ;;  %v4215_v17 = vld [vmem:[#allocation5 + $0x3e4] sm:$0xf]  ;;  %v3198_v31 = vor.u32 %v4183_v15, %v3195_v16 }
  0x4b   :  { %1429 = vmatpush.bf16.msra.mxu2 %v3038_v24  ;;  %v3465_v9 = vld [vmem:[#allocation5 + $0x500] sm:$0xf]  ;;  %v3323_v18 = vld [vmem:[#allocation5 + $0x3f0] sm:$0xf0]  ;;  %v4247_v19 = vld [vmem:[#allocation5 + $0x4e4] sm:$0xf]  ;;  %v3338_v22 = vor.u32 %v4221_v7, %v3337_v6 }
  0x4c   :  { %1375 = vmatpush.bf16.msrb.mxu0 %v3386_v39  ;;  %v3451_v20 = vld [vmem:[#allocation5 + $0x4f0] sm:$0xf0]  ;;  %v115_v24 = vld [vmem:[#allocation2 + $0x58] sm:$0xff]  ;;  %v4123_v25 = vld [vmem:[#allocation5 + $0x104] sm:$0xf]  ;;  %v3466_v26 = vor.u32 %v4253_v12, %v3465_v9  ;;  %v3326_v32 = vor.u32 %v4215_v17, %v3323_v18 }
  0x4d   :  { %1389 = vmatpush.bf16.msrb.mxu1 %v3514_v42  ;;  %3607 = vmatmul.msk.bf16.vlgmr.msrb.gmra.mxu2 %vm1311_vm0, %v4671_v50  ;;  %v108_v23 = vld [vmem:[#allocation2 + $0x20] sm:$0xff]  ;;  %v109_v29 = vld [vmem:[#allocation2 + $0x28] sm:$0xff]  ;;  %v4279_v33 = vld [vmem:[#allocation5 + $0x5e4] sm:$0xf]  ;;  %v3454_v36 = vor.u32 %v4247_v19, %v3451_v20 }
  0x4e   :  { %1417 = vmatpush.bf16.msrb.mxu3 %v2878_v43  ;;  %v2955_v28 = vld [vmem:[#allocation5 + $0x110] sm:$0xf0]  ;;  %v4179_v35 = vld [vmem:[#allocation5 + $0x2c4] sm:$0xf]  ;;  %v4675_v37 = vpack.c.bf16 %v115_v24, %v108_v23 }
  0x4f   :  { %1430 = vmatpush.bf16.msra.mxu2 %v3022_v38  ;;  %v116_v30 = vld [vmem:[#allocation2 + $0x60] sm:$0xff]  ;;  %v4211_v39 = vld [vmem:[#allocation5 + $0x3c4] sm:$0xf]  ;;  %v2958_v41 = vor.u32 %v4123_v25, %v2955_v28 }
  0x50   :  { %1376 = vmatpush.bf16.msrb.mxu0 %v3370_v52  ;;  %v3579_v34 = vld [vmem:[#allocation5 + $0x5f0] sm:$0xf0]  ;;  %v4677_v42 = vpack.c.bf16 %v116_v30, %v109_v29  ;;  %v4243_v43 = vld [vmem:[#allocation5 + $0x4c4] sm:$0xf] }
  0x51   :  { %1390 = vmatpush.bf16.msrb.mxu1 %v3498_v57  ;;  %v3179_v38 = vld [vmem:[#allocation5 + $0x2d0] sm:$0xf0]  ;;  %v3582_v45 = vor.u32 %v4279_v33, %v3579_v34  ;;  %v4275_v48 = vld [vmem:[#allocation5 + $0x5c4] sm:$0xf] }
  0x52   :  { %1418 = vmatpush.bf16.msrb.mxu3 %v2862_v58  ;;  %v3307_v40 = vld [vmem:[#allocation5 + $0x3d0] sm:$0xf0]  ;;  %v3182_v46 = vor.u32 %v4179_v35, %v3179_v38  ;;  %v4207_v56 = vld [vmem:[#allocation5 + $0x3a4] sm:$0xf] }
  0x53   :  { %1431 = vmatpush.bf16.msra.mxu2 %v3006_v51  ;;  %v3435_v44 = vld [vmem:[#allocation5 + $0x4d0] sm:$0xf0]  ;;  %v3310_v47 = vor.u32 %v4211_v39, %v3307_v40  ;;  %v4175_v51 = vld [vmem:[#allocation5 + $0x2a4] sm:$0xf] }
  0x54   :  { %1377 = vmatpush.bf16.msrb.mxu0 %v3354_v5  ;;  %v3563_v49 = vld [vmem:[#allocation5 + $0x5d0] sm:$0xf0]  ;;  %v3438_v52 = vor.u32 %v4243_v43, %v3435_v44  ;;  %v4239_v58 = vld [vmem:[#allocation5 + $0x4a4] sm:$0xf] }
  0x55   :  { %1391 = vmatpush.bf16.msrb.mxu1 %v3482_v10  ;;  %v3163_v53 = vld [vmem:[#allocation5 + $0x2b0] sm:$0xf0]  ;;  %v3566_v61 = vor.u32 %v4275_v48, %v3563_v49  ;;  %v4271_v0 = vld [vmem:[#allocation5 + $0x5a4] sm:$0xf] }
  0x56   :  { %1419 = vmatpush.bf16.msrb.mxu3 %v2846_v11  ;;  %v3291_v57 = vld [vmem:[#allocation5 + $0x3b0] sm:$0xf0]  ;;  %v3166_v62 = vor.u32 %v4175_v51, %v3163_v53  ;;  %v4171_v2 = vld [vmem:[#allocation5 + $0x284] sm:$0xf] }
  0x57   :  { %1432 = vmatpush.bf16.msra.mxu2 %v2990_v4  ;;  %v3419_v59 = vld [vmem:[#allocation5 + $0x4b0] sm:$0xf0]  ;;  %v3294_v63 = vor.u32 %v4207_v56, %v3291_v57  ;;  %v4203_v5 = vld [vmem:[#allocation5 + $0x384] sm:$0xf] }
  0x58   :  { %1378 = vmatpush.bf16.msrb.mxu0 %v3338_v22  ;;  %v3547_v1 = vld [vmem:[#allocation5 + $0x5b0] sm:$0xf0]  ;;  %v3422_v3 = vor.u32 %v4239_v58, %v3419_v59  ;;  %v4235_v7 = vld [vmem:[#allocation5 + $0x484] sm:$0xf] }
  0x59   :  { %1392 = vmatpush.bf16.msrb.mxu1 %v3466_v26  ;;  %v3147_v4 = vld [vmem:[#allocation5 + $0x290] sm:$0xf0]  ;;  %v3550_v10 = vor.u32 %v4271_v0, %v3547_v1  ;;  %v4267_v13 = vld [vmem:[#allocation5 + $0x584] sm:$0xf]  ;;  %v2945_v0 = vld [vmem:[#allocation5 + $0xe8] sm:$0xf] }
  0x5a   :  { %1420 = vmatpush.bf16.msrb.mxu3 %v2830_v27  ;;  %v3275_v6 = vld [vmem:[#allocation5 + $0x390] sm:$0xf0]  ;;  %v3150_v11 = vor.u32 %v4171_v2, %v3147_v4  ;;  %v4167_v15 = vld [vmem:[#allocation5 + $0x264] sm:$0xf]  ;;  %v4122_v1 = vld [vmem:[#allocation5 + $0xf4] sm:$0xf0] }
  0x5b   :  { %1433 = vmatpush.bf16.msra.mxu2 %v2974_v21  ;;  %1379 = vmatmul.bf16.vlgmr.msrb.gmra.mxu0 %v4675_v37  ;;  %v3403_v9 = vld [vmem:[#allocation5 + $0x490] sm:$0xf0]  ;;  %v3278_v12 = vor.u32 %v4203_v5, %v3275_v6  ;;  %v4199_v18 = vld [vmem:[#allocation5 + $0x364] sm:$0xf]  ;;  %v3073_v2 = vld [vmem:[#allocation5 + $0x1e8] sm:$0xf] }
  0x5c   :  { %1441 = vmatpush.bf16.msra.mxu0 %v3198_v31  ;;  %1393 = vmatmul.bf16.vlgmr.msrb.gmra.mxu1 %v4677_v42  ;;  %v3531_v14 = vld [vmem:[#allocation5 + $0x590] sm:$0xf0]  ;;  %v3406_v16 = vor.u32 %v4235_v7, %v3403_v9  ;;  %v4231_v20 = vld [vmem:[#allocation5 + $0x464] sm:$0xf]  ;;  %v4154_v4 = vld [vmem:[#allocation5 + $0x1f4] sm:$0xf0] }
  0x5d   :  { %1455 = vmatpush.bf16.msra.mxu1 %v3326_v32  ;;  %1421 = vmatmul.bf16.vlgmr.msrb.gmra.mxu3 %v4661_v55  ;;  %v3131_v17 = vld [vmem:[#allocation5 + $0x270] sm:$0xf0]  ;;  %v3534_v22 = vor.u32 %v4267_v13, %v3531_v14  ;;  %v4263_v25 = vld [vmem:[#allocation5 + $0x564] sm:$0xf]  ;;  %v2946_v13 = vor.u32 %v4122_v1, %v2945_v0  ;;  %v3201_v14 = vld [vmem:[#allocation5 + $0x2e8] sm:$0xf] }
  0x5e   :  { %1469 = vmatpush.bf16.msra.mxu3 %v3454_v36  ;;  %v3259_v19 = vld [vmem:[#allocation5 + $0x370] sm:$0xf0]  ;;  %v3134_v23 = vor.u32 %v4167_v15, %v3131_v17  ;;  %v4163_v27 = vld [vmem:[#allocation5 + $0x244] sm:$0xf]  ;;  %v4186_v15 = vld [vmem:[#allocation5 + $0x2f4] sm:$0xf0]  ;;  %v3074_v17 = vor.u32 %v4154_v4, %v3073_v2 }
  0x5f   :  { %1434 = vmatpush.bf16.msra.mxu2 %v2958_v41  ;;  %v3387_v21 = vld [vmem:[#allocation5 + $0x470] sm:$0xf0]  ;;  %v3262_v24 = vor.u32 %v4199_v18, %v3259_v19  ;;  %v4195_v30 = vld [vmem:[#allocation5 + $0x344] sm:$0xf]  ;;  %v4218_v19 = vld [vmem:[#allocation5 + $0x3f4] sm:$0xf0] }
  0x60   :  { %1442 = vmatpush.bf16.msra.mxu0 %v3182_v46  ;;  %v3515_v26 = vld [vmem:[#allocation5 + $0x570] sm:$0xf0]  ;;  %v3390_v28 = vor.u32 %v4231_v20, %v3387_v21  ;;  %v4227_v32 = vld [vmem:[#allocation5 + $0x444] sm:$0xf]  ;;  %v2929_v20 = vld [vmem:[#allocation5 + $0xc8] sm:$0xf] }
  0x61   :  { %1456 = vmatpush.bf16.msra.mxu1 %v3310_v47  ;;  %v3115_v29 = vld [vmem:[#allocation5 + $0x250] sm:$0xf0]  ;;  %v3518_v34 = vor.u32 %v4263_v25, %v3515_v26  ;;  %v4259_v38 = vld [vmem:[#allocation5 + $0x544] sm:$0xf]  ;;  %v4118_v21 = vld [vmem:[#allocation5 + $0xd4] sm:$0xf0]  ;;  %v3202_v25 = vor.u32 %v4186_v15, %v3201_v14 }
  0x62   :  { %1470 = vmatpush.bf16.msra.mxu3 %v3438_v52  ;;  %1435 = vmatmul.bf16.vlgmr.msra.gmra.mxu2 %v4667_v8  ;;  %v3243_v31 = vld [vmem:[#allocation5 + $0x350] sm:$0xf0]  ;;  %v3118_v35 = vor.u32 %v4163_v27, %v3115_v29  ;;  %v4159_v40 = vld [vmem:[#allocation5 + $0x224] sm:$0xf]  ;;  %v2930_v27 = vor.u32 %v4118_v21, %v2929_v20  ;;  %v4182_v29 = vld [vmem:[#allocation5 + $0x2d4] sm:$0xf0] }
  0x63   :  { %1483 = vmatpush.bf16.msrb.mxu2 %v3582_v45  ;;  %v3371_v33 = vld [vmem:[#allocation5 + $0x450] sm:$0xf0]  ;;  %v3246_v36 = vor.u32 %v4195_v30, %v3243_v31  ;;  %v4191_v44 = vld [vmem:[#allocation5 + $0x324] sm:$0xf]  ;;  %v3313_v30 = vld [vmem:[#allocation5 + $0x3c8] sm:$0xf] }
  0x64   :  { %1443 = vmatpush.bf16.msra.mxu0 %v3166_v62  ;;  %v3499_v39 = vld [vmem:[#allocation5 + $0x550] sm:$0xf0]  ;;  %v3374_v41 = vor.u32 %v4227_v32, %v3371_v33  ;;  %v4223_v46 = vld [vmem:[#allocation5 + $0x424] sm:$0xf]  ;;  %v4214_v32 = vld [vmem:[#allocation5 + $0x3d4] sm:$0xf0] }
  0x65   :  { %1457 = vmatpush.bf16.msra.mxu1 %v3294_v63  ;;  %v3099_v43 = vld [vmem:[#allocation5 + $0x230] sm:$0xf0]  ;;  %v3502_v48 = vor.u32 %v4259_v38, %v3499_v39  ;;  %v4255_v49 = vld [vmem:[#allocation5 + $0x524] sm:$0xf]  ;;  %v2913_v33 = vld [vmem:[#allocation5 + $0xa8] sm:$0xf]  ;;  %v3314_v39 = vor.u32 %v4214_v32, %v3313_v30 }
  0x66   :  { %1471 = vmatpush.bf16.msra.mxu3 %v3422_v3  ;;  %v3227_v45 = vld [vmem:[#allocation5 + $0x330] sm:$0xf0]  ;;  %v3102_v52 = vor.u32 %v4159_v40, %v3099_v43  ;;  %v4155_v56 = vld [vmem:[#allocation5 + $0x204] sm:$0xf]  ;;  %v4178_v43 = vld [vmem:[#allocation5 + $0x2b4] sm:$0xf0] }
  0x67   :  { %1484 = vmatpush.bf16.msrb.mxu2 %v3566_v61  ;;  %v3355_v47 = vld [vmem:[#allocation5 + $0x430] sm:$0xf0]  ;;  %v3230_v53 = vor.u32 %v4191_v44, %v3227_v45  ;;  %v4187_v58 = vld [vmem:[#allocation5 + $0x304] sm:$0xf]  ;;  %v3297_v44 = vld [vmem:[#allocation5 + $0x3a8] sm:$0xf] }
  0x68   :  { %1444 = vmatpush.bf16.msra.mxu0 %v3150_v11  ;;  %v3483_v51 = vld [vmem:[#allocation5 + $0x530] sm:$0xf0]  ;;  %v3358_v59 = vor.u32 %v4223_v46, %v3355_v47  ;;  %v4219_v62 = vld [vmem:[#allocation5 + $0x404] sm:$0xf]  ;;  %v4210_v46 = vld [vmem:[#allocation5 + $0x3b4] sm:$0xf0] }
  0x69   :  { %1458 = vmatpush.bf16.msra.mxu1 %v3278_v12  ;;  %v3083_v57 = vld [vmem:[#allocation5 + $0x210] sm:$0xf0]  ;;  %v3486_v3 = vor.u32 %v4255_v49, %v3483_v51  ;;  %v4283_v5 = vld [vmem:[#allocation5 + $0x604] sm:$0xf]  ;;  %v2897_v47 = vld [vmem:[#allocation5 + $0x88] sm:$0xf] }
  0x6a   :  { %1472 = vmatpush.bf16.msra.mxu3 %v3406_v16  ;;  %v3211_v61 = vld [vmem:[#allocation5 + $0x310] sm:$0xf0]  ;;  %v3086_v7 = vor.u32 %v4155_v56, %v3083_v57  ;;  %v3329_v16 = vld [vmem:[#allocation5 + $0x3e8] sm:$0xf]  ;;  %v4142_v51 = vld [vmem:[#allocation5 + $0x194] sm:$0xf0]  ;;  %v3298_v56 = vor.u32 %v4210_v46, %v3297_v44 }
  0x6b   :  { %1485 = vmatpush.bf16.msrb.mxu2 %v3550_v10  ;;  %v3339_v63 = vld [vmem:[#allocation5 + $0x410] sm:$0xf0]  ;;  %v3214_v9 = vor.u32 %v4187_v58, %v3211_v61  ;;  %v4251_v10 = vld [vmem:[#allocation5 + $0x504] sm:$0xf]  ;;  %v3330_v26 = vor.u32 %v4218_v19, %v3329_v16  ;;  %v3025_v49 = vld [vmem:[#allocation5 + $0x188] sm:$0xf] }
  0x6c   :  { %1445 = vmatpush.bf16.msra.mxu0 %v3134_v23  ;;  %v3595_v6 = vld [vmem:[#allocation5 + $0x610] sm:$0xf0]  ;;  %v3342_v12 = vor.u32 %v4219_v62, %v3339_v63  ;;  %v3057_v23 = vld [vmem:[#allocation5 + $0x1c8] sm:$0xf]  ;;  %v4174_v58 = vld [vmem:[#allocation5 + $0x294] sm:$0xf0]  ;;  %v3026_v61 = vor.u32 %v4142_v51, %v3025_v49 }
  0x6d   :  { %1459 = vmatpush.bf16.msra.mxu1 %v3262_v24  ;;  %v3467_v11 = vld [vmem:[#allocation5 + $0x510] sm:$0xf0]  ;;  %v3598_v18 = vor.u32 %v4283_v5, %v3595_v6  ;;  %v4150_v24 = vld [vmem:[#allocation5 + $0x1d4] sm:$0xf0]  ;;  %v2881_v63 = vld [vmem:[#allocation5 + $0x68] sm:$0xf] }
  0x6e   :  { %1473 = vmatpush.bf16.msra.mxu3 %v3390_v28  ;;  %v3185_v28 = vld [vmem:[#allocation5 + $0x2c8] sm:$0xf]  ;;  %v3058_v31 = vor.u32 %v4150_v24, %v3057_v23  ;;  %v4206_v62 = vld [vmem:[#allocation5 + $0x394] sm:$0xf0] }
  0x6f   :  { %1486 = vmatpush.bf16.msrb.mxu2 %v3534_v22  ;;  %v3470_v22 = vor.u32 %v4251_v10, %v3467_v11  ;;  %v3186_v38 = vor.u32 %v4182_v29, %v3185_v28  ;;  %v4106_v0 = vld [vmem:[#allocation5 + $0x74] sm:$0xf0]  ;;  %v3009_v1 = vld [vmem:[#allocation5 + $0x168] sm:$0xf] }
  0x70   :  { %1446 = vmatpush.bf16.msra.mxu0 %v3118_v35  ;;  %v3041_v35 = vld [vmem:[#allocation5 + $0x1a8] sm:$0xf]  ;;  %v4138_v2 = vld [vmem:[#allocation5 + $0x174] sm:$0xf0]  ;;  %v2882_v5 = vor.u32 %v4106_v0, %v2881_v63 }
  0x71   :  { %1460 = vmatpush.bf16.msra.mxu1 %v3246_v36  ;;  %v4146_v36 = vld [vmem:[#allocation5 + $0x1b4] sm:$0xf0]  ;;  %v3137_v6 = vld [vmem:[#allocation5 + $0x268] sm:$0xf]  ;;  %v3010_v10 = vor.u32 %v4138_v2, %v3009_v1 }
  0x72   :  { %1474 = vmatpush.bf16.msra.mxu3 %v3374_v41  ;;  %v3169_v41 = vld [vmem:[#allocation5 + $0x2a8] sm:$0xf]  ;;  %v3042_v45 = vor.u32 %v4146_v36, %v3041_v35  ;;  %v4202_v11 = vld [vmem:[#allocation5 + $0x374] sm:$0xf0] }
  0x73   :  { %1487 = vmatpush.bf16.msrb.mxu2 %v3518_v34  ;;  %v4114_v34 = vld [vmem:[#allocation5 + $0xb4] sm:$0xf0]  ;;  %v2993_v14 = vld [vmem:[#allocation5 + $0x148] sm:$0xf] }
  0x74   :  { %1447 = vmatpush.bf16.msra.mxu0 %v3102_v52  ;;  %v2914_v40 = vor.u32 %v4114_v34, %v2913_v33  ;;  %v3170_v52 = vor.u32 %v4178_v43, %v3169_v41  ;;  %v4134_v15 = vld [vmem:[#allocation5 + $0x154] sm:$0xf0]  ;;  %v3121_v19 = vld [vmem:[#allocation5 + $0x248] sm:$0xf] }
  0x75   :  { %1461 = vmatpush.bf16.msra.mxu1 %v3230_v53  ;;  %v3153_v53 = vld [vmem:[#allocation5 + $0x288] sm:$0xf]  ;;  %v4166_v20 = vld [vmem:[#allocation5 + $0x254] sm:$0xf0] }
  0x76   :  { %1475 = vmatpush.bf16.msra.mxu3 %v3358_v59  ;;  %v3281_v59 = vld [vmem:[#allocation5 + $0x388] sm:$0xf]  ;;  %v4198_v23 = vld [vmem:[#allocation5 + $0x354] sm:$0xf0]  ;;  %v3122_v28 = vor.u32 %v4166_v20, %v3121_v19 }
  0x77   :  { %1488 = vmatpush.bf16.msrb.mxu2 %v3502_v48  ;;  %v4110_v48 = vld [vmem:[#allocation5 + $0x94] sm:$0xf0]  ;;  %v3282_v4 = vor.u32 %v4206_v62, %v3281_v59  ;;  %v3249_v21 = vld [vmem:[#allocation5 + $0x348] sm:$0xf]  ;;  %v2947_v59 = vld [vmem:[#allocation5 + $0xf8] sm:$0xf0] }
  0x78   :  { %1448 = vmatpush.bf16.msra.mxu0 %v3086_v7  ;;  %v2898_v57 = vor.u32 %v4110_v48, %v2897_v47  ;;  %v4170_v7 = vld [vmem:[#allocation5 + $0x274] sm:$0xf0]  ;;  %v2849_v24 = vld [vmem:[#allocation5 + $0x28] sm:$0xf]  ;;  %v3250_v30 = vor.u32 %v4198_v23, %v3249_v21  ;;  %v3059_v23 = vld [vmem:[#allocation5 + $0x1d8] sm:$0xf0] }
  0x79   :  { %1462 = vmatpush.bf16.msra.mxu1 %v3214_v9  ;;  %v3265_v9 = vld [vmem:[#allocation5 + $0x368] sm:$0xf]  ;;  %v3138_v16 = vor.u32 %v4170_v7, %v3137_v6  ;;  %v4162_v32 = vld [vmem:[#allocation5 + $0x234] sm:$0xf0] }
  0x7a   :  { %1476 = vmatpush.bf16.msra.mxu3 %v3342_v12  ;;  %v2865_v12 = vld [vmem:[#allocation5 + $0x48] sm:$0xf]  ;;  %v4194_v34 = vld [vmem:[#allocation5 + $0x334] sm:$0xf0] }
  0x7b   :  { %1489 = vmatpush.bf16.msrb.mxu2 %v3486_v3  ;;  %1449 = vmatmul.bf16.vlgmr.msra.gmra.mxu0 %v4659_v54  ;;  %v3154_v3 = vor.u32 %v4174_v58, %v3153_v53  ;;  %v3105_v29 = vld [vmem:[#allocation5 + $0x228] sm:$0xf]  ;;  %v4250_v43 = vld [vmem:[#allocation5 + $0x4f4] sm:$0xf0]  ;;  %v4120_v58 = vld [vmem:[#allocation5 + $0xec] sm:$0xf] }
  0x7c   :  { %1504 = vmatpush.bf16.msrb.mxu0 %v3598_v18  ;;  %1463 = vmatmul.bf16.vlgmr.msra.gmra.mxu1 %v4663_v60  ;;  %v3233_v33 = vld [vmem:[#allocation5 + $0x328] sm:$0xf]  ;;  %v3106_v44 = vor.u32 %v4162_v32, %v3105_v29  ;;  %v4282_v46 = vld [vmem:[#allocation5 + $0x5f4] sm:$0xf0]  ;;  %v2950_v6 = vor.u32 %v4120_v58, %v2947_v59 }
  0x7d   :  { %1511 = vmatpush.bf16.msrb.mxu1 %v2946_v13  ;;  %1477 = vmatmul.bf16.vlgmr.msra.gmra.mxu3 %v4675_v37  ;;  %v4102_v13 = vld [vmem:[#allocation5 + $0x54] sm:$0xf0]  ;;  %v2833_v36 = vld [vmem:[#allocation5 + $0x8] sm:$0xf]  ;;  %v3234_v47 = vor.u32 %v4194_v34, %v3233_v33  ;;  %v4144_v34 = vld [vmem:[#allocation5 + $0x1ac] sm:$0xf] }
  0x7e   :  { %1525 = vmatpush.bf16.msrb.mxu3 %v3074_v17  ;;  %v3266_v17 = vor.u32 %v4202_v11, %v3265_v9  ;;  %v2866_v18 = vor.u32 %v4102_v13, %v2865_v12  ;;  %v3457_v41 = vld [vmem:[#allocation5 + $0x4e8] sm:$0xf]  ;;  %v4158_v51 = vld [vmem:[#allocation5 + $0x214] sm:$0xf0]  ;;  %v4152_v9 = vld [vmem:[#allocation5 + $0x1ec] sm:$0xf] }
  0x7f   :  { %1490 = vmatpush.bf16.msrb.mxu2 %v3470_v22  ;;  %v2994_v22 = vor.u32 %v4134_v15, %v2993_v14  ;;  %v3089_v49 = vld [vmem:[#allocation5 + $0x208] sm:$0xf]  ;;  %v4246_v63 = vld [vmem:[#allocation5 + $0x4d4] sm:$0xf0]  ;;  %v4116_v11 = vld [vmem:[#allocation5 + $0xcc] sm:$0xf] }
  0x80   :  { %1539 = vmatpush.bf16.msra.mxu0 %v3202_v25  ;;  %v4098_v25 = vld [vmem:[#allocation5 + $0x34] sm:$0xf0]  ;;  %v3441_v62 = vld [vmem:[#allocation5 + $0x4c8] sm:$0xf]  ;;  %v3090_v1 = vor.u32 %v4158_v51, %v3089_v49  ;;  %v2931_v14 = vld [vmem:[#allocation5 + $0xd8] sm:$0xf0] }
  0x81   :  { %1512 = vmatpush.bf16.msrb.mxu1 %v2930_v27  ;;  %v4130_v27 = vld [vmem:[#allocation5 + $0x134] sm:$0xf0]  ;;  %v3569_v0 = vld [vmem:[#allocation5 + $0x5c8] sm:$0xf]  ;;  %v3442_v7 = vor.u32 %v4246_v63, %v3441_v62  ;;  %v2934_v20 = vor.u32 %v4116_v11, %v2931_v14  ;;  %v3027_v49 = vld [vmem:[#allocation5 + $0x198] sm:$0xf0] }
  0x82   :  { %1526 = vmatpush.bf16.msrb.mxu3 %v3058_v31  ;;  %1491 = vmatmul.bf16.vlgmr.msrb.gmra.mxu2 %v4677_v42  ;;  %v2850_v31 = vor.u32 %v4098_v25, %v2849_v24  ;;  %v4278_v2 = vld [vmem:[#allocation5 + $0x5d4] sm:$0xf0]  ;;  %v3425_v15 = vld [vmem:[#allocation5 + $0x4a8] sm:$0xf]  ;;  %v4112_v24 = vld [vmem:[#allocation5 + $0xac] sm:$0xf] }
  0x83   :  { %1553 = vmatpush.bf16.msra.mxu2 %v3330_v26  ;;  %v2977_v26 = vld [vmem:[#allocation5 + $0x128] sm:$0xf]  ;;  %v3570_v12 = vor.u32 %v4278_v2, %v3569_v0  ;;  %v4104_v51 = vld [vmem:[#allocation5 + $0x6c] sm:$0xf]  ;;  %v4262_v59 = vld [vmem:[#allocation5 + $0x554] sm:$0xf0] }
  0x84   :  { %1540 = vmatpush.bf16.msra.mxu0 %v3186_v38  ;;  %v2978_v35 = vor.u32 %v4130_v27, %v2977_v26  ;;  %v4094_v38 = vld [vmem:[#allocation5 + $0x14] sm:$0xf0]  ;;  %v2915_v26 = vld [vmem:[#allocation5 + $0xb8] sm:$0xf0]  ;;  %v3409_v27 = vld [vmem:[#allocation5 + $0x488] sm:$0xf] }
  0x85   :  { %1513 = vmatpush.bf16.msrb.mxu1 %v2914_v40  ;;  %v4126_v40 = vld [vmem:[#allocation5 + $0x114] sm:$0xf0]  ;;  %v2834_v48 = vor.u32 %v4094_v38, %v2833_v36  ;;  %v3537_v29 = vld [vmem:[#allocation5 + $0x588] sm:$0xf]  ;;  %v2918_v32 = vor.u32 %v4112_v24, %v2915_v26  ;;  %v4108_v36 = vld [vmem:[#allocation5 + $0x8c] sm:$0xf] }
  0x86   :  { %1527 = vmatpush.bf16.msrb.mxu3 %v3042_v45  ;;  %v3585_v45 = vld [vmem:[#allocation5 + $0x5e8] sm:$0xf]  ;;  %v4136_v0 = vld [vmem:[#allocation5 + $0x16c] sm:$0xf]  ;;  %v2995_v14 = vld [vmem:[#allocation5 + $0x158] sm:$0xf0] }
  0x87   :  { %1554 = vmatpush.bf16.msra.mxu2 %v3314_v39  ;;  %v2961_v39 = vld [vmem:[#allocation5 + $0x108] sm:$0xf]  ;;  %v4100_v2 = vld [vmem:[#allocation5 + $0x4c] sm:$0xf]  ;;  %v3331_v26 = vld [vmem:[#allocation5 + $0x3f8] sm:$0xf0] }
  0x88   :  { %1541 = vmatpush.bf16.msra.mxu0 %v3170_v52  ;;  %v3217_v52 = vld [vmem:[#allocation5 + $0x308] sm:$0xf]  ;;  %v2962_v53 = vor.u32 %v4126_v40, %v2961_v39  ;;  %v2899_v39 = vld [vmem:[#allocation5 + $0x98] sm:$0xf0]  ;;  %v4132_v11 = vld [vmem:[#allocation5 + $0x14c] sm:$0xf] }
  0x89   :  { %1514 = vmatpush.bf16.msrb.mxu1 %v2898_v57  ;;  %v4190_v57 = vld [vmem:[#allocation5 + $0x314] sm:$0xf0]  ;;  %v3393_v40 = vld [vmem:[#allocation5 + $0x468] sm:$0xf]  ;;  %v2998_v24 = vor.u32 %v4132_v11, %v2995_v14  ;;  %v4204_v11 = vld [vmem:[#allocation5 + $0x38c] sm:$0xf] }
  0x8a   :  { %1528 = vmatpush.bf16.msrb.mxu3 %v3026_v61  ;;  %v3586_v61 = vor.u32 %v4282_v46, %v3585_v45  ;;  %v2902_v46 = vor.u32 %v4108_v36, %v2899_v39  ;;  %v3505_v58 = vld [vmem:[#allocation5 + $0x548] sm:$0xf]  ;;  %v4180_v39 = vld [vmem:[#allocation5 + $0x2cc] sm:$0xf] }
  0x8b   :  { %1555 = vmatpush.bf16.msra.mxu2 %v3298_v56  ;;  %3608 = vmatmul.msk.bf16.vlgmr.msrb.gmra.mxu0 %vm1311_vm0, %v4671_v50  ;;  %v3458_v56 = vor.u32 %v4250_v43, %v3457_v41  ;;  %v4234_v41 = vld [vmem:[#allocation5 + $0x474] sm:$0xf0]  ;;  %v3521_v43 = vld [vmem:[#allocation5 + $0x568] sm:$0xf] }
  0x8c   :  { %1542 = vmatpush.bf16.msra.mxu0 %v3154_v3  ;;  %v3601_v3 = vld [vmem:[#allocation5 + $0x608] sm:$0xf] }
  0x8d   :  { %1515 = vmatpush.bf16.msrb.mxu1 %v2882_v5  ;;  %v3218_v5 = vor.u32 %v4190_v57, %v3217_v52  ;;  %v4230_v57 = vld [vmem:[#allocation5 + $0x454] sm:$0xf0] }
  0x8e   :  { %1529 = vmatpush.bf16.msrb.mxu3 %v3010_v10  ;;  %v3075_v10 = vld [vmem:[#allocation5 + $0x1f8] sm:$0xf0] }
  0x8f   :  { %1556 = vmatpush.bf16.msra.mxu2 %v3282_v4  ;;  %v4286_v4 = vld [vmem:[#allocation5 + $0x614] sm:$0xf0]  ;;  %v3078_v19 = vor.u32 %v4152_v9, %v3075_v10 }
  0x90   :  { %1543 = vmatpush.bf16.msra.mxu0 %v3138_v16  ;;  %v3602_v13 = vor.u32 %v4286_v4, %v3601_v3  ;;  %v4242_v16 = vld [vmem:[#allocation5 + $0x4b4] sm:$0xf0]  ;;  %v3506_v3 = vor.u32 %v4262_v59, %v3505_v58  ;;  %v2867_v4 = vld [vmem:[#allocation5 + $0x58] sm:$0xf0]  ;;  %v4176_v58 = vld [vmem:[#allocation5 + $0x2ac] sm:$0xf] }
  0x91   :  { %1516 = vmatpush.bf16.msrb.mxu1 %v2866_v18  ;;  %v4274_v18 = vld [vmem:[#allocation5 + $0x5b4] sm:$0xf0]  ;;  %v3426_v21 = vor.u32 %v4242_v16, %v3425_v15  ;;  %v4096_v15 = vld [vmem:[#allocation5 + $0x2c] sm:$0xf]  ;;  %v2851_v16 = vld [vmem:[#allocation5 + $0x38] sm:$0xf0] }
  0x92   :  { %1530 = vmatpush.bf16.msrb.mxu3 %v2994_v22  ;;  %v4148_v22 = vld [vmem:[#allocation5 + $0x1cc] sm:$0xf]  ;;  %v4258_v9 = vld [vmem:[#allocation5 + $0x534] sm:$0xf0]  ;;  %v3171_v59 = vld [vmem:[#allocation5 + $0x2b8] sm:$0xf0] }
  0x93   :  { %1557 = vmatpush.bf16.msra.mxu2 %v3266_v17  ;;  %v3553_v17 = vld [vmem:[#allocation5 + $0x5a8] sm:$0xf] }
  0x94   :  { %1544 = vmatpush.bf16.msra.mxu0 %v3122_v28  ;;  %v3554_v25 = vor.u32 %v4274_v18, %v3553_v17  ;;  %v4238_v28 = vld [vmem:[#allocation5 + $0x494] sm:$0xf0]  ;;  %v3345_v18 = vld [vmem:[#allocation5 + $0x408] sm:$0xf] }
  0x95   :  { %1517 = vmatpush.bf16.msrb.mxu1 %v2850_v31  ;;  %v3062_v31 = vor.u32 %v4148_v22, %v3059_v23  ;;  %v3410_v33 = vor.u32 %v4238_v28, %v3409_v27  ;;  %v4184_v22 = vld [vmem:[#allocation5 + $0x2ec] sm:$0xf]  ;;  %v3203_v23 = vld [vmem:[#allocation5 + $0x2f8] sm:$0xf0]  ;;  %v2854_v27 = vor.u32 %v4096_v15, %v2851_v16 }
  0x96   :  { %1531 = vmatpush.bf16.msrb.mxu3 %v2978_v35  ;;  %v3043_v35 = vld [vmem:[#allocation5 + $0x1b8] sm:$0xf0]  ;;  %v4272_v16 = vld [vmem:[#allocation5 + $0x5ac] sm:$0xf] }
  0x97   :  { %1558 = vmatpush.bf16.msra.mxu2 %v3250_v30  ;;  %v4270_v30 = vld [vmem:[#allocation5 + $0x594] sm:$0xf0]  ;;  %v3046_v45 = vor.u32 %v4144_v34, %v3043_v35  ;;  %v2835_v34 = vld [vmem:[#allocation5 + $0x18] sm:$0xf0]  ;;  %v4248_v35 = vld [vmem:[#allocation5 + $0x4ec] sm:$0xf] }
  0x98   :  { %1545 = vmatpush.bf16.msra.mxu0 %v3106_v44  ;;  %v3538_v38 = vor.u32 %v4270_v30, %v3537_v29  ;;  %v4266_v44 = vld [vmem:[#allocation5 + $0x574] sm:$0xf0]  ;;  %v4128_v29 = vld [vmem:[#allocation5 + $0x12c] sm:$0xf]  ;;  %v2979_v30 = vld [vmem:[#allocation5 + $0x138] sm:$0xf0] }
  0x99   :  { %1518 = vmatpush.bf16.msrb.mxu1 %v2834_v48  ;;  %v4140_v48 = vld [vmem:[#allocation5 + $0x18c] sm:$0xf]  ;;  %v3522_v52 = vor.u32 %v4266_v44, %v3521_v43  ;;  %v3315_v44 = vld [vmem:[#allocation5 + $0x3d8] sm:$0xf0] }
  0x9a   :  { %1532 = vmatpush.bf16.msrb.mxu3 %v2962_v53  ;;  %v2883_v53 = vld [vmem:[#allocation5 + $0x78] sm:$0xf0]  ;;  %v4212_v43 = vld [vmem:[#allocation5 + $0x3cc] sm:$0xf] }
  0x9b   :  { %1559 = vmatpush.bf16.msra.mxu2 %v3234_v47  ;;  %v3394_v47 = vor.u32 %v4234_v41, %v3393_v40  ;;  %v2886_v62 = vor.u32 %v4104_v51, %v2883_v53  ;;  %v3187_v40 = vld [vmem:[#allocation5 + $0x2d8] sm:$0xf0]  ;;  %v2982_v41 = vor.u32 %v4128_v29, %v2979_v30  ;;  %v4280_v51 = vld [vmem:[#allocation5 + $0x5ec] sm:$0xf] }
  0x9c   :  { %1546 = vmatpush.bf16.msra.mxu0 %v3090_v1  ;;  %1519 = vmatmul.bf16.vlgmr.msrb.gmra.mxu1 %v4661_v55  ;;  %v3011_v1 = vld [vmem:[#allocation5 + $0x178] sm:$0xf0]  ;;  %v4244_v53 = vld [vmem:[#allocation5 + $0x4cc] sm:$0xf] }
  0x9d   :  { %1567 = vmatpush.bf16.msra.mxu1 %v3458_v56  ;;  %1533 = vmatmul.bf16.vlgmr.msrb.gmra.mxu3 %v4667_v8  ;;  %v3377_v56 = vld [vmem:[#allocation5 + $0x448] sm:$0xf]  ;;  %v3014_v10 = vor.u32 %v4136_v0, %v3011_v1  ;;  %v4232_v29 = vld [vmem:[#allocation5 + $0x46c] sm:$0xf] }
  0x9e   :  { %1581 = vmatpush.bf16.msra.mxu3 %v3586_v61  ;;  %v3030_v61 = vor.u32 %v4140_v48, %v3027_v49  ;;  %v3378_v63 = vor.u32 %v4230_v57, %v3377_v56  ;;  %v3190_v49 = vor.u32 %v4180_v39, %v3187_v40  ;;  %v3318_v56 = vor.u32 %v4212_v43, %v3315_v44  ;;  %v3443_v57 = vld [vmem:[#allocation5 + $0x4d8] sm:$0xf0]  ;;  %v4264_v39 = vld [vmem:[#allocation5 + $0x56c] sm:$0xf] }
  0x9f   :  { %1560 = vmatpush.bf16.msra.mxu2 %v3218_v5  ;;  %1547 = vmatmul.bf16.vlgmr.msra.gmra.mxu0 %v4659_v54  ;;  %v3361_v5 = vld [vmem:[#allocation5 + $0x428] sm:$0xf]  ;;  %v3446_v1 = vor.u32 %v4244_v53, %v3443_v57  ;;  %v3523_v40 = vld [vmem:[#allocation5 + $0x578] sm:$0xf0] }
  0xa0   :  { %1602 = vmatpush.bf16.msrb.mxu0 %v3602_v13  ;;  %v3379_v44 = vld [vmem:[#allocation5 + $0x458] sm:$0xf0] }
  0xa1   :  { %1568 = vmatpush.bf16.msra.mxu1 %v3442_v7  ;;  %v3489_v7 = vld [vmem:[#allocation5 + $0x528] sm:$0xf]  ;;  %v3507_v57 = vld [vmem:[#allocation5 + $0x558] sm:$0xf0] }
  0xa2   :  { %1582 = vmatpush.bf16.msra.mxu3 %v3570_v12  ;;  %1561 = vmatmul.bf16.vlgmr.msra.gmra.mxu2 %v4663_v60  ;;  %v2870_v12 = vor.u32 %v4100_v2, %v2867_v4  ;;  %v3490_v17 = vor.u32 %v4258_v9, %v3489_v7  ;;  %v3174_v2 = vor.u32 %v4176_v58, %v3171_v59  ;;  %v3571_v4 = vld [vmem:[#allocation5 + $0x5d8] sm:$0xf0]  ;;  %v4172_v9 = vld [vmem:[#allocation5 + $0x28c] sm:$0xf] }
  0xa3   :  { %1609 = vmatpush.bf16.msrb.mxu2 %v2950_v6  ;;  %v4226_v6 = vld [vmem:[#allocation5 + $0x434] sm:$0xf0]  ;;  %v3427_v7 = vld [vmem:[#allocation5 + $0x4b8] sm:$0xf0]  ;;  %v4224_v58 = vld [vmem:[#allocation5 + $0x42c] sm:$0xf] }
  0xa4   :  { %1623 = vmatpush.bf16.msra.mxu0 %v3078_v19  ;;  %v3362_v13 = vor.u32 %v4226_v6, %v3361_v5  ;;  %v4222_v19 = vld [vmem:[#allocation5 + $0x414] sm:$0xf0]  ;;  %v4240_v5 = vld [vmem:[#allocation5 + $0x4ac] sm:$0xf]  ;;  %v3363_v59 = vld [vmem:[#allocation5 + $0x438] sm:$0xf0] }
  0xa5   :  { %1569 = vmatpush.bf16.msra.mxu1 %v3426_v21  ;;  %v4254_v21 = vld [vmem:[#allocation5 + $0x514] sm:$0xf0]  ;;  %v3346_v28 = vor.u32 %v4222_v19, %v3345_v18  ;;  %v3430_v14 = vor.u32 %v4240_v5, %v3427_v7  ;;  %v4236_v18 = vld [vmem:[#allocation5 + $0x48c] sm:$0xf]  ;;  %v3603_v5 = vld [vmem:[#allocation5 + $0x618] sm:$0xf0] }
  0xa6   :  { %1583 = vmatpush.bf16.msra.mxu3 %v3554_v25  ;;  %v4216_v25 = vld [vmem:[#allocation5 + $0x3ec] sm:$0xf] }
  0xa7   :  { %1610 = vmatpush.bf16.msrb.mxu2 %v2934_v20  ;;  %v3473_v20 = vld [vmem:[#allocation5 + $0x508] sm:$0xf]  ;;  %v3334_v36 = vor.u32 %v4216_v25, %v3331_v26 }
  0xa8   :  { %1624 = vmatpush.bf16.msra.mxu0 %v3062_v31  ;;  %v3474_v31 = vor.u32 %v4254_v21, %v3473_v20  ;;  %v3411_v20 = vld [vmem:[#allocation5 + $0x498] sm:$0xf0]  ;;  %v4168_v21 = vld [vmem:[#allocation5 + $0x26c] sm:$0xf] }
  0xa9   :  { %1570 = vmatpush.bf16.msra.mxu1 %v3410_v33  ;;  %v4092_v33 = vld [vmem:[#allocation5 + $0xc] sm:$0xf]  ;;  %v3414_v25 = vor.u32 %v4236_v18, %v3411_v20  ;;  %v3347_v18 = vld [vmem:[#allocation5 + $0x418] sm:$0xf0] }
  0xaa   :  { %1584 = vmatpush.bf16.msra.mxu3 %v3538_v38  ;;  %v3459_v38 = vld [vmem:[#allocation5 + $0x4f8] sm:$0xf0] }
  0xab   :  { %1611 = vmatpush.bf16.msrb.mxu2 %v2918_v32  ;;  %v3206_v32 = vor.u32 %v4184_v22, %v3203_v23  ;;  %v3462_v48 = vor.u32 %v4248_v35, %v3459_v38  ;;  %v3139_v22 = vld [vmem:[#allocation5 + $0x278] sm:$0xf0]  ;;  %v4200_v23 = vld [vmem:[#allocation5 + $0x36c] sm:$0xf] }
  0xac   :  { %1625 = vmatpush.bf16.msra.mxu0 %v3046_v45  ;;  %v2838_v45 = vor.u32 %v4092_v33, %v2835_v34  ;;  %v3142_v26 = vor.u32 %v4168_v21, %v3139_v22  ;;  %v3123_v33 = vld [vmem:[#allocation5 + $0x258] sm:$0xf0]  ;;  %v4196_v34 = vld [vmem:[#allocation5 + $0x34c] sm:$0xf]  ;;  %v4333_v22 = vld [vmem:[#allocation8 + $0x170] sm:$0xf0] }
  0xad   :  { %1571 = vmatpush.bf16.msra.mxu1 %v3394_v47  ;;  %v2963_v47 = vld [vmem:[#allocation5 + $0x118] sm:$0xf0]  ;;  %v3793_v21 = vld [vmem:[#allocation8 + $0x168] sm:$0xf] }
  0xae   :  { %1585 = vmatpush.bf16.msra.mxu3 %v3522_v52  ;;  %v3587_v52 = vld [vmem:[#allocation5 + $0x5f8] sm:$0xf0] }
  0xaf   :  { %1612 = vmatpush.bf16.msrb.mxu2 %v2902_v46  ;;  %3609 = vmatmul.msk.bf16.vlgmr.msrb.gmra.mxu0 %vm1311_vm0, %v4671_v50  ;;  %v4124_v46 = vld [vmem:[#allocation5 + $0x10c] sm:$0xf]  ;;  %v3590_v0 = vor.u32 %v4280_v51, %v3587_v52  ;;  %v3251_v35 = vld [vmem:[#allocation5 + $0x358] sm:$0xf0]  ;;  %v4699_v52 = vld [vmem:[#allocation7] sm:$0xf] }
  0xb0   :  { %1626 = vmatpush.bf16.msra.mxu0 %v3030_v61  ;;  %v2966_v61 = vor.u32 %v4124_v46, %v2963_v47  ;;  %v3254_v43 = vor.u32 %v4196_v34, %v3251_v35  ;;  %v3107_v46 = vld [vmem:[#allocation5 + $0x238] sm:$0xf0]  ;;  %v4192_v47 = vld [vmem:[#allocation5 + $0x32c] sm:$0xf] }
  0xb1   :  { %1572 = vmatpush.bf16.msra.mxu1 %v3378_v63  ;;  %v3299_v63 = vld [vmem:[#allocation5 + $0x3b8] sm:$0xf0]  ;;  %v4260_v51 = vld [vmem:[#allocation5 + $0x54c] sm:$0xf] }
  0xb2   :  { %1586 = vmatpush.bf16.msra.mxu3 %v3506_v3  ;;  %v4276_v3 = vld [vmem:[#allocation5 + $0x5cc] sm:$0xf]  ;;  %v3510_v7 = vor.u32 %v4260_v51, %v3507_v57  ;;  %v3673_v35 = vld [vmem:[#allocation8 + $0x78] sm:$0xf] }
  0xb3   :  { %1613 = vmatpush.bf16.msrb.mxu2 %v2886_v62  ;;  %v4208_v62 = vld [vmem:[#allocation5 + $0x3ac] sm:$0xf] }
  0xb4   :  { %1627 = vmatpush.bf16.msra.mxu0 %v3014_v10  ;;  %v3302_v6 = vor.u32 %v4208_v62, %v3299_v63  ;;  %v3155_v10 = vld [vmem:[#allocation5 + $0x298] sm:$0xf0]  ;;  %v4156_v63 = vld [vmem:[#allocation5 + $0x20c] sm:$0xf] }
  0xb5   :  { %1573 = vmatpush.bf16.msra.mxu1 %v3362_v13  ;;  %v3574_v13 = vor.u32 %v4276_v3, %v3571_v4  ;;  %v3158_v15 = vor.u32 %v4172_v9, %v3155_v10  ;;  %v3219_v3 = vld [vmem:[#allocation5 + $0x318] sm:$0xf0]  ;;  %v4284_v4 = vld [vmem:[#allocation5 + $0x60c] sm:$0xf]  ;;  %v4309_v10 = vld [vmem:[#allocation8 + $0xb0] sm:$0xf0] }
  0xb6   :  { %1587 = vmatpush.bf16.msra.mxu3 %v3490_v17  ;;  %v3555_v17 = vld [vmem:[#allocation5 + $0x5b8] sm:$0xf0]  ;;  %v3697_v9 = vld [vmem:[#allocation8 + $0xa8] sm:$0xf] }
  0xb7   :  { %1614 = vmatpush.bf16.msrb.mxu2 %v2870_v12  ;;  %v3283_v12 = vld [vmem:[#allocation5 + $0x398] sm:$0xf0]  ;;  %v3698_v20 = vor.u32 %v4309_v10, %v3697_v9 }
  0xb8   :  { %1628 = vmatpush.bf16.msra.mxu0 %v2998_v24  ;;  %v3286_v19 = vor.u32 %v4204_v11, %v3283_v12  ;;  %v3267_v24 = vld [vmem:[#allocation5 + $0x378] sm:$0xf0]  ;;  %v3366_v11 = vor.u32 %v4224_v58, %v3363_v59  ;;  %v3649_v58 = vld [vmem:[#allocation8 + $0x48] sm:$0xf]  ;;  %v4297_v59 = vld [vmem:[#allocation8 + $0x50] sm:$0xf0] }
  0xb9   :  { %1574 = vmatpush.bf16.msra.mxu1 %v3346_v28  ;;  %v3539_v28 = vld [vmem:[#allocation5 + $0x598] sm:$0xf0]  ;;  %v3270_v30 = vor.u32 %v4200_v23, %v3267_v24  ;;  %v3685_v24 = vld [vmem:[#allocation8 + $0x90] sm:$0xf] }
  0xba   :  { %1588 = vmatpush.bf16.msra.mxu3 %v3474_v31  ;;  %v3395_v31 = vld [vmem:[#allocation5 + $0x478] sm:$0xf0] }
  0xbb   :  { %1615 = vmatpush.bf16.msrb.mxu2 %v2854_v27  ;;  %v4268_v27 = vld [vmem:[#allocation5 + $0x58c] sm:$0xf] }
  0xbc   :  { %1629 = vmatpush.bf16.msra.mxu0 %v2982_v41  ;;  %1575 = vmatmul.bf16.vlgmr.msra.gmra.mxu1 %v4675_v37  ;;  %v4228_v41 = vld [vmem:[#allocation5 + $0x44c] sm:$0xf] }
  0xbd   :  { %1637 = vmatpush.bf16.msrb.mxu1 %v3206_v32  ;;  %1589 = vmatmul.bf16.vlgmr.msra.gmra.mxu3 %v4677_v42  ;;  %v4164_v32 = vld [vmem:[#allocation5 + $0x24c] sm:$0xf]  ;;  %v3382_v53 = vor.u32 %v4228_v41, %v3379_v44 }
  0xbe   :  { %1651 = vmatpush.bf16.msrb.mxu3 %v3334_v36  ;;  %v3398_v36 = vor.u32 %v4232_v29, %v3395_v31  ;;  %v3126_v38 = vor.u32 %v4164_v32, %v3123_v33  ;;  %v3794_v29 = vor.u32 %v4333_v22, %v3793_v21  ;;  %v3781_v31 = vld [vmem:[#allocation8 + $0x150] sm:$0xf]  ;;  %v4330_v32 = vld [vmem:[#allocation8 + $0x158] sm:$0xf0]  ;;  %v3721_v22 = vld [vmem:[#allocation8 + $0xd8] sm:$0xf] }
  0xbf   :  { %1616 = vmatpush.bf16.msrb.mxu2 %v2838_v45  ;;  %v4160_v45 = vld [vmem:[#allocation5 + $0x22c] sm:$0xf]  ;;  %v3782_v41 = vor.u32 %v4330_v32, %v3781_v31  ;;  %v3709_v32 = vld [vmem:[#allocation8 + $0xc0] sm:$0xf] }
  0xc0   :  { %1630 = vmatpush.bf16.msra.mxu0 %v2966_v61  ;;  %v1324_v61 = vpop.f32.mrf.mxu0 }
  0xc1   :  { %1638 = vmatpush.bf16.msrb.mxu1 %v3190_v49  ;;  %v3526_v49 = vor.u32 %v4264_v39, %v3523_v40 }
  0xc2   :  { %1652 = vmatpush.bf16.msrb.mxu3 %v3318_v56  ;;  %1617 = vmatmul.bf16.vlgmr.msrb.gmra.mxu2 %v4661_v55  ;;  %v3558_v55 = vor.u32 %v4272_v16, %v3555_v17  ;;  %v3110_v56 = vor.u32 %v4160_v45, %v3107_v46  ;;  %v4220_v17 = vld [vmem:[#allocation5 + $0x40c] sm:$0xf]  ;;  %v1366_v39 = vpop.f32.mrf.mxu3  ;;  %v3769_v45 = vld [vmem:[#allocation8 + $0x138] sm:$0xf]  ;;  %v4327_v46 = vld [vmem:[#allocation8 + $0x140] sm:$0xf0] }
  0xc3   :  { %1665 = vmatpush.bf16.msra.mxu2 %v3462_v48  ;;  %1631 = vmatmul.bf16.vlgmr.msra.gmra.mxu0 %v4667_v8  ;;  %v3542_v8 = vor.u32 %v4268_v27, %v3539_v28  ;;  %v3235_v48 = vld [vmem:[#allocation5 + $0x338] sm:$0xf0] }
  0xc4   :  { %1679 = vmatpush.bf16.msrb.mxu0 %v3590_v0  ;;  %v3238_v62 = vor.u32 %v4192_v47, %v3235_v48  ;;  %v3091_v0 = vld [vmem:[#allocation5 + $0x218] sm:$0xf0]  ;;  %v4300_v47 = vld [vmem:[#allocation8 + $0x68] sm:$0xf0] }
  0xc5   :  { %1639 = vmatpush.bf16.msrb.mxu1 %v3174_v2  ;;  %v1338_v2 = vpop.f32.mrf.mxu1  ;;  %v3094_v12 = vor.u32 %v4156_v63, %v3091_v0  ;;  %v3475_v27 = vld [vmem:[#allocation5 + $0x518] sm:$0xf0] }
  0xc6   :  { %1653 = vmatpush.bf16.msrb.mxu3 %v3302_v6  ;;  %v1352_v6 = vpop.f32.mrf.mxu2 }
  0xc7   :  { %1666 = vmatpush.bf16.msra.mxu2 %v3446_v1  ;;  %v4188_v1 = vld [vmem:[#allocation5 + $0x30c] sm:$0xf] }
  0xc8   :  { %1680 = vmatpush.bf16.msrb.mxu0 %v3574_v13  ;;  %v4256_v13 = vld [vmem:[#allocation5 + $0x52c] sm:$0xf]  ;;  %v3222_v16 = vor.u32 %v4188_v1, %v3219_v3  ;;  %v1326_v33 = vpop.f32.mrf.mxu0  ;;  %v3650_v1 = vor.u32 %v4297_v59, %v3649_v58  ;;  %v4321_v3 = vld [vmem:[#allocation8 + $0x110] sm:$0xf0] }
  0xc9   :  { %1640 = vmatpush.bf16.msrb.mxu1 %v3158_v15  ;;  %v323_v15 = vperm.slane %v4699_v52, 0  ;;  %v3771_v59 = vld [vmem:[#allocation8 + $0x144] sm:$0xf0] }
  0xca   :  { %1654 = vmatpush.bf16.msrb.mxu3 %v3286_v19  ;;  %v3606_v19 = vor.u32 %v4284_v4, %v3603_v5  ;;  %v1368_v4 = vpop.f32.mrf.mxu3 }
  0xcb   :  { %1667 = vmatpush.bf16.msra.mxu2 %v3430_v14  ;;  %v3491_v14 = vld [vmem:[#allocation5 + $0x538] sm:$0xf0]  ;;  %v1325_v28 = vadd.f32 %v1324_v61, %v323_v15 }
  0xcc   :  { %1681 = vmatpush.bf16.msrb.mxu0 %v3558_v55  ;;  %v3494_v23 = vor.u32 %v4256_v13, %v3491_v14  ;;  %v4306_v55 = vld [vmem:[#allocation8 + $0x98] sm:$0xf0] }
  0xcd   :  { %1641 = vmatpush.bf16.msrb.mxu1 %v3142_v26  ;;  %v4252_v26 = vld [vmem:[#allocation5 + $0x50c] sm:$0xf] }
  0xce   :  { %1655 = vmatpush.bf16.msrb.mxu3 %v3270_v30  ;;  %v3686_v30 = vor.u32 %v4306_v55, %v3685_v24  ;;  %v3478_v34 = vor.u32 %v4252_v26, %v3475_v27  ;;  %v1354_v40 = vpop.f32.mrf.mxu2  ;;  %v4288_v26 = vld [vmem:[#allocation8 + $0x8] sm:$0xf0] }
  0xcf   :  { %1668 = vmatpush.bf16.msra.mxu2 %v3414_v25  ;;  %v3350_v25 = vor.u32 %v4220_v17, %v3347_v18 }
  0xd0   :  { %1682 = vmatpush.bf16.msrb.mxu0 %v3542_v8  ;;  %v4303_v8 = vld [vmem:[#allocation8 + $0x80] sm:$0xf0] }
  0xd1   :  { %1642 = vmatpush.bf16.msrb.mxu1 %v3126_v38  ;;  %v1339_v38 = vadd.f32 %v1338_v2, %v1325_v28  ;;  %v3674_v44 = vor.u32 %v4303_v8, %v3673_v35  ;;  %v3745_v2 = vld [vmem:[#allocation8 + $0x108] sm:$0xf]  ;;  %v4308_v28 = vld [vmem:[#allocation8 + $0xac] sm:$0xf] }
  0xd2   :  { %1656 = vmatpush.bf16.msrb.mxu3 %v3254_v43  ;;  %v1327_v43 = vadd.f32 %v1326_v33, %v323_v15  ;;  %v3625_v15 = vld [vmem:[#allocation8 + $0x18] sm:$0xf]  ;;  %v4312_v33 = vld [vmem:[#allocation8 + $0xc8] sm:$0xf0] }
  0xd3   :  { %1669 = vmatpush.bf16.msra.mxu2 %v3398_v36  ;;  %v1340_v36 = vpop.f32.mrf.mxu1  ;;  %v1353_v48 = vadd.f32 %v1352_v6, %v1339_v38  ;;  %v4294_v6 = vld [vmem:[#allocation8 + $0x38] sm:$0xf0]  ;;  %v4332_v8 = vld [vmem:[#allocation8 + $0x16c] sm:$0xf] }
  0xd4   :  { %1683 = vmatpush.bf16.msrb.mxu0 %v3526_v49  ;;  %v3770_v49 = vor.u32 %v4327_v46, %v3769_v45  ;;  %v4329_v45 = vld [vmem:[#allocation8 + $0x154] sm:$0xf] }
  0xd5   :  { %1643 = vmatpush.bf16.msrb.mxu1 %v3110_v56  ;;  %v4324_v56 = vld [vmem:[#allocation8 + $0x128] sm:$0xf0] }
  0xd6   :  { %1657 = vmatpush.bf16.msrb.mxu3 %v3238_v62  ;;  %v1367_v62 = vadd.f32 %v1366_v39, %v1353_v48  ;;  %v1408_v63 = vpop.f32.mrf.mxu2  ;;  %v4305_v39 = vld [vmem:[#allocation8 + $0x94] sm:$0xf]  ;;  %v3889_v48 = vld [vmem:[#allocation8 + $0x228] sm:$0xf] }
  0xd7   :  { %1670 = vmatpush.bf16.msra.mxu2 %v3382_v53  ;;  %v3757_v53 = vld [vmem:[#allocation8 + $0x120] sm:$0xf] }
  0xd8   :  { %1684 = vmatpush.bf16.msrb.mxu0 %v3510_v7  ;;  %v1380_v57 = vpop.f32.mrf.mxu0  ;;  %v3746_v7 = vor.u32 %v4321_v3, %v3745_v2 }
  0xd9   :  { %1644 = vmatpush.bf16.msrb.mxu1 %v3094_v12  ;;  %v1381_v5 = vadd.f32 %v1380_v57, %v1367_v62  ;;  %v4318_v12 = vld [vmem:[#allocation8 + $0xf8] sm:$0xf0] }
  0xda   :  { %1658 = vmatpush.bf16.msrb.mxu3 %v3222_v16  ;;  %v4291_v16 = vld [vmem:[#allocation8 + $0x20] sm:$0xf0]  ;;  %v4326_v57 = vld [vmem:[#allocation8 + $0x13c] sm:$0xf] }
  0xdb   :  { %1671 = vmatpush.bf16.msra.mxu2 %v3366_v11  ;;  %v1394_v61 = vpop.f32.mrf.mxu1  ;;  %v3733_v11 = vld [vmem:[#allocation8 + $0xf0] sm:$0xf]  ;;  %v3626_v21 = vor.u32 %v4291_v16, %v3625_v15  ;;  %v4354_v62 = vld [vmem:[#allocation8 + $0x218] sm:$0xf0]  ;;  %v3774_v3 = vor.u32 %v4326_v57, %v3771_v59  ;;  %v4320_v16 = vld [vmem:[#allocation8 + $0x10c] sm:$0xf] }
  0xdc   :  { %1685 = vmatpush.bf16.msrb.mxu0 %v3494_v23  ;;  %1645 = vmatmul.bf16.vlgmr.msrb.gmra.mxu1 %v4659_v54  ;;  %v3661_v54 = vld [vmem:[#allocation8 + $0x60] sm:$0xf]  ;;  %v1395_v13 = vadd.f32 %v1394_v61, %v1381_v5  ;;  %v4315_v23 = vld [vmem:[#allocation8 + $0xe0] sm:$0xf0]  ;;  %v3877_v61 = vld [vmem:[#allocation8 + $0x210] sm:$0xf] }
  0xdd   :  { %1700 = vmatpush.bf16.msra.mxu1 %v3606_v19  ;;  %1659 = vmatmul.bf16.vlgmr.msrb.gmra.mxu3 %v4663_v60  ;;  %v1341_v60 = vadd.f32 %v1340_v36, %v1327_v43  ;;  %v3662_v51 = vor.u32 %v4300_v47, %v3661_v54  ;;  %v3734_v19 = vor.u32 %v4318_v12, %v3733_v11  ;;  %v3795_v36 = vld [vmem:[#allocation8 + $0x174] sm:$0xf0]  ;;  %v3783_v47 = vld [vmem:[#allocation8 + $0x15c] sm:$0xf0] }
  0xde   :  { %2367 = vmatpush.bf16.msra.mxu3 %v3698_v20  ;;  %v1409_v24 = vadd.f32 %v1408_v63, %v1395_v13  ;;  %v1410_v55 = vpop.f32.mrf.mxu2  ;;  %v3710_v43 = vor.u32 %v4312_v33, %v3709_v32  ;;  %v324_v63 = vperm.slane %v4699_v52, 1  ;;  %v3651_v11 = vld [vmem:[#allocation8 + $0x54] sm:$0xf0] }
  0xdf   :  { %1672 = vmatpush.bf16.msra.mxu2 %v3350_v25  ;;  %v1355_v0 = vadd.f32 %v1354_v40, %v1341_v60  ;;  %v3613_v25 = vld [vmem:[#allocation8] sm:$0xf]  ;;  %v4302_v60 = vld [vmem:[#allocation8 + $0x7c] sm:$0xf] }
  0xe0   :  { %1686 = vmatpush.bf16.msrb.mxu0 %v3478_v34  ;;  %v1382_v14 = vpop.f32.mrf.mxu0  ;;  %v3614_v31 = vor.u32 %v4288_v26, %v3613_v25  ;;  %v1707_v34 = vmax.f32 %v1409_v24, 0.0  ;;  %v1422_v38 = vpop.f32.mrf.mxu3  ;;  %v3687_v40 = vld [vmem:[#allocation8 + $0x9c] sm:$0xf0]  ;;  %v4293_v24 = vld [vmem:[#allocation8 + $0x34] sm:$0xf] }
  0xe1   :  { %2381 = vmatpush.bf16.msrb.mxu1 %v3794_v29  ;;  %v1369_v9 = vadd.f32 %v1368_v4, %v1355_v0  ;;  %v3699_v29 = vld [vmem:[#allocation8 + $0xb4] sm:$0xf0]  ;;  %v3690_v54 = vor.u32 %v4305_v39, %v3687_v40  ;;  %v3663_v0 = vld [vmem:[#allocation8 + $0x6c] sm:$0xf0]  ;;  %v4323_v4 = vld [vmem:[#allocation8 + $0x124] sm:$0xf] }
  0xe2   :  { %2368 = vmatpush.bf16.msra.mxu3 %v3686_v30  ;;  %1673 = vmatmul.bf16.vlgmr.msra.gmra.mxu2 %v4675_v37  ;;  %v3758_v37 = vor.u32 %v4324_v56, %v3757_v53  ;;  %v3702_v35 = vor.u32 %v4308_v28, %v3699_v29  ;;  %v3786_v56 = vor.u32 %v4329_v45, %v3783_v47  ;;  %v3735_v29 = vld [vmem:[#allocation8 + $0xfc] sm:$0xf0]  ;;  %v4314_v39 = vld [vmem:[#allocation8 + $0xdc] sm:$0xf]  ;;  %v3829_v45 = vld [vmem:[#allocation8 + $0x1b0] sm:$0xf] }
  0xe3   :  { %1687 = vmatmul.bf16.vlgmr.msrb.gmra.mxu0 %v4677_v42  ;;  %v3637_v42 = vld [vmem:[#allocation8 + $0x30] sm:$0xf]  ;;  %v1383_v17 = vadd.f32 %v1382_v14, %v1369_v9  ;;  %v1396_v18 = vpop.f32.mrf.mxu1  ;;  %v1423_v9 = vadd.f32 %v1422_v38, %v324_v63 }
  0xe4   :  { %v3638_v10 = vor.u32 %v4294_v6, %v3637_v42  ;;  %v3759_v42 = vld [vmem:[#allocation8 + $0x12c] sm:$0xf0]  ;;  %v3865_v6 = vld [vmem:[#allocation8 + $0x1f8] sm:$0xf] }
  0xe5   :  { %2382 = vmatpush.bf16.msrb.mxu1 %v3782_v41  ;;  %v1397_v20 = vadd.f32 %v1396_v18, %v1383_v17  ;;  %v3762_v15 = vor.u32 %v4323_v4, %v3759_v42  ;;  %v3747_v18 = vld [vmem:[#allocation8 + $0x114] sm:$0xf0]  ;;  %v4307_v42 = vld [vmem:[#allocation8 + $0xa0] sm:$0xf0] }
  0xe6   :  { %2369 = vmatpush.bf16.msra.mxu3 %v3674_v44  ;;  %v3798_v44 = vor.u32 %v4332_v8, %v3795_v36  ;;  %v1436_v46 = vpop.f32.mrf.mxu2  ;;  %v3750_v26 = vor.u32 %v4320_v16, %v3747_v18  ;;  %v3681_v16 = vld [vmem:[#allocation8 + $0x80] sm:$0xf]  ;;  %v3891_v18 = vld [vmem:[#allocation8 + $0x234] sm:$0xf0] }
  0xe7   :  { %v1411_v27 = vadd.f32 %v1410_v55, %v1397_v20  ;;  %v4348_v20 = vld [vmem:[#allocation8 + $0x1e8] sm:$0xf0]  ;;  %v3639_v55 = vld [vmem:[#allocation8 + $0x3c] sm:$0xf0] }
  0xe8   :  { %v1424_v2 = vpop.f32.mrf.mxu3  ;;  %v3642_v28 = vor.u32 %v4293_v24, %v3639_v55  ;;  %v3879_v24 = vld [vmem:[#allocation8 + $0x21c] sm:$0xf0] }
  0xe9   :  { %2383 = vmatpush.bf16.msrb.mxu1 %v3770_v49  ;;  %v1711_v30 = vmax.f32 %v1411_v27, 0.0  ;;  %v4357_v49 = vld [vmem:[#allocation8 + $0x230] sm:$0xf0] }
  0xea   :  { %2370 = vmatpush.bf16.msra.mxu3 %v3662_v51  ;;  %v3675_v51 = vld [vmem:[#allocation8 + $0x84] sm:$0xf0]  ;;  %v3890_v53 = vor.u32 %v4357_v49, %v3889_v48  ;;  %v4317_v27 = vld [vmem:[#allocation8 + $0xf4] sm:$0xf]  ;;  %v4287_v48 = vld [vmem:[#allocation8 + $0x4] sm:$0xf] }
  0xeb   :  { %v4708_v41 = vpack.c.bf16 %v1711_v30, %v1707_v34  ;;  %v3678_v58 = vor.u32 %v4302_v60, %v3675_v51  ;;  %v4345_v30 = vld [vmem:[#allocation8 + $0x1d0] sm:$0xf0]  ;;  %v4290_v34 = vld [vmem:[#allocation8 + $0x1c] sm:$0xf]  ;;  %v3738_v38 = vor.u32 %v4317_v27, %v3735_v29  ;;  %v3615_v49 = vld [vmem:[#allocation8 + $0xc] sm:$0xf0] }
  0xec   :  { %3610 = vmatmul.msk.bf16.vlgmr.msra.gmra.mxu1 %vm1311_vm0, %v4671_v50  ;;  %v3722_v50 = vor.u32 %v4315_v23, %v3721_v22  ;;  %2395 = vmatpush.bf16.msrb.mxu2 %v3890_v53  ;;  %v1425_v22 = vadd.f32 %v1424_v2, %v324_v63  ;;  %v3705_v53 = vld [vmem:[#allocation8 + $0xb0] sm:$0xf]  ;;  %v3618_v59 = vor.u32 %v4287_v48, %v3615_v49  ;;  %v4339_v63 = vld [vmem:[#allocation8 + $0x1a0] sm:$0xf0]  ;;  %v4378_v48 = vld [vmem:[#allocation8 + $0x2d8] sm:$0xf0] }
  0xed   :  { %2384 = vmatpush.bf16.msrb.mxu1 %v3758_v37  ;;  %v4299_v37 = vld [vmem:[#allocation8 + $0x64] sm:$0xf]  ;;  %v3801_v29 = vld [vmem:[#allocation8 + $0x170] sm:$0xf] }
  0xee   :  { %2371 = vmatpush.bf16.msra.mxu3 %v3650_v1  ;;  %v3878_v1 = vor.u32 %v4354_v62, %v3877_v61  ;;  %v3666_v5 = vor.u32 %v4299_v37, %v3663_v0  ;;  %v1438_v14 = vpop.f32.mrf.mxu2  ;;  %v3711_v61 = vld [vmem:[#allocation8 + $0xcc] sm:$0xf0]  ;;  %v3817_v62 = vld [vmem:[#allocation8 + $0x198] sm:$0xf]  ;;  %v4347_v49 = vld [vmem:[#allocation8 + $0x1e4] sm:$0xf] }
  0xef   :  { %v1439_v32 = vadd.f32 %v1438_v14, %v1425_v22  ;;  %v3818_v2 = vor.u32 %v4339_v63, %v3817_v62  ;;  %v4356_v14 = vld [vmem:[#allocation8 + $0x22c] sm:$0xf]  ;;  %v3961_v63 = vld [vmem:[#allocation8 + $0x2b8] sm:$0xf] }
  0xf0   :  { %2396 = vmatpush.bf16.msrb.mxu2 %v3878_v1 }
  0xf1   :  { %2385 = vmatpush.bf16.msrb.mxu1 %v3746_v7  ;;  %v4351_v7 = vld [vmem:[#allocation8 + $0x200] sm:$0xf0] }
  0xf2   :  { %2372 = vmatpush.bf16.msra.mxu3 %v3638_v10  ;;  %v4296_v10 = vld [vmem:[#allocation8 + $0x4c] sm:$0xf]  ;;  %v3866_v12 = vor.u32 %v4351_v7, %v3865_v6  ;;  %v3805_v7 = vld [vmem:[#allocation8 + $0x180] sm:$0xf] }
  0xf3   :  { %v3654_v17 = vor.u32 %v4296_v10, %v3651_v11 }
  0xf4   :  { %2397 = vmatpush.bf16.msrb.mxu2 %v3866_v12 }
  0xf5   :  { %2386 = vmatpush.bf16.msrb.mxu1 %v3734_v19  ;;  %v3853_v19 = vld [vmem:[#allocation8 + $0x1e0] sm:$0xf] }
  0xf6   :  { %2373 = vmatpush.bf16.msra.mxu3 %v3626_v21  ;;  %v1437_v21 = vadd.f32 %v1436_v46, %v1423_v9  ;;  %v3854_v25 = vor.u32 %v4348_v20, %v3853_v19  ;;  %v4342_v46 = vld [vmem:[#allocation8 + $0x1b8] sm:$0xf0]  ;;  %v4336_v9 = vld [vmem:[#allocation8 + $0x188] sm:$0xf0]  ;;  %v3894_v19 = vor.u32 %v4356_v14, %v3891_v18  ;;  %v3621_v14 = vld [vmem:[#allocation8 + $0x8] sm:$0xf] }
  0xf7   :  { %v3830_v60 = vor.u32 %v4342_v46, %v3829_v45  ;;  %v4331_v45 = vld [vmem:[#allocation8 + $0x160] sm:$0xf0] }
  0xf8   :  { %v1450_v13 = vpop.f32.mrf.mxu0  ;;  %2398 = vmatpush.bf16.msrb.mxu2 %v3854_v25  ;;  %v3669_v25 = vld [vmem:[#allocation8 + $0x68] sm:$0xf] }
  0xf9   :  { %2387 = vmatpush.bf16.msrb.mxu1 %v3722_v50  ;;  %v1464_v23 = vpop.f32.mrf.mxu1  ;;  %v3841_v50 = vld [vmem:[#allocation8 + $0x1c8] sm:$0xf] }
  0xfa   :  { %2374 = vmatpush.bf16.msra.mxu3 %v3614_v31  ;;  %v1451_v31 = vadd.f32 %v1450_v13, %v1437_v21  ;;  %v3842_v8 = vor.u32 %v4345_v30, %v3841_v50  ;;  %v3806_v13 = vor.u32 %v4336_v9, %v3805_v7  ;;  %v4334_v50 = vld [vmem:[#allocation8 + $0x178] sm:$0xf0]  ;;  %v3657_v30 = vld [vmem:[#allocation8 + $0x50] sm:$0xf] }
  0xfc   :  { %2399 = vmatpush.bf16.msrb.mxu2 %v3842_v8  ;;  %v3802_v8 = vor.u32 %v4334_v50, %v3801_v29  ;;  %v3741_v29 = vld [vmem:[#allocation8 + $0xf8] sm:$0xf]  ;;  %v4319_v50 = vld [vmem:[#allocation8 + $0x100] sm:$0xf0] }
  0xfd   :  { %2375 = vmatmul.bf16.vlgmr.msra.gmra.mxu3 %v4708_v41  ;;  %2388 = vmatpush.bf16.msrb.mxu1 %v3710_v43 }
  0xfe   :  { %2423 = vmatpush.bf16.msrb.mxu3 %v3702_v35  ;;  %v3627_v35 = vld [vmem:[#allocation8 + $0x24] sm:$0xf0] }
  0xff   :  { %v3630_v43 = vor.u32 %v4290_v34, %v3627_v35  ;;  %v3985_v34 = vld [vmem:[#allocation8 + $0x2e8] sm:$0xf]  ;;  %v4381_v35 = vld [vmem:[#allocation8 + $0x2f0] sm:$0xf0] }
 0x100   :  { %v1478_v33 = vpop.f32.mrf.mxu3  ;;  %v1452_v36 = vpop.f32.mrf.mxu0  ;;  %2400 = vmatpush.bf16.msrb.mxu2 %v3830_v60 }
 0x101   :  { %2437 = vmatpush.bf16.msra.mxu1 %v3798_v44  ;;  %v3723_v44 = vld [vmem:[#allocation8 + $0xe4] sm:$0xf0]  ;;  %v1453_v47 = vadd.f32 %v1452_v36, %v1439_v32  ;;  %v1466_v51 = vpop.f32.mrf.mxu1  ;;  %v4298_v36 = vld [vmem:[#allocation8 + $0x58] sm:$0xf0] }
 0x102   :  { %2424 = vmatpush.bf16.msrb.mxu3 %v3690_v54  ;;  %v1465_v54 = vadd.f32 %v1464_v23, %v1451_v31  ;;  %v3726_v57 = vor.u32 %v4314_v39, %v3723_v44  ;;  %v4353_v23 = vld [vmem:[#allocation8 + $0x214] sm:$0xf]  ;;  %v4350_v39 = vld [vmem:[#allocation8 + $0x1fc] sm:$0xf]  ;;  %v3789_v44 = vld [vmem:[#allocation8 + $0x158] sm:$0xf] }
 0x103   :  { %v1467_v0 = vadd.f32 %v1466_v51, %v1453_v47  ;;  %v3882_v27 = vor.u32 %v4353_v23, %v3879_v24  ;;  %v3973_v47 = vld [vmem:[#allocation8 + $0x2d0] sm:$0xf]  ;;  %v3790_v60 = vor.u32 %v4331_v45, %v3789_v44  ;;  %v3645_v51 = vld [vmem:[#allocation8 + $0x38] sm:$0xf]  ;;  %v3937_v24 = vld [vmem:[#allocation8 + $0x288] sm:$0xf] }
 0x104   :  { %v1479_v37 = vadd.f32 %v1478_v33, %v1465_v54  ;;  %2401 = vmatpush.bf16.msrb.mxu2 %v3818_v2  ;;  %v3658_v54 = vor.u32 %v4298_v36, %v3657_v30  ;;  %v3633_v2 = vld [vmem:[#allocation8 + $0x20] sm:$0xf]  ;;  %v3807_v36 = vld [vmem:[#allocation8 + $0x18c] sm:$0xf0]  ;;  %v325_v44 = vperm.slane %v4699_v52, 2 }
 0x105   :  { %2438 = vmatpush.bf16.msra.mxu1 %v3786_v56  ;;  %v1492_v40 = vpop.f32.mrf.mxu2  ;;  %v4310_v56 = vld [vmem:[#allocation8 + $0xb8] sm:$0xf0] }
 0x106   :  { %2425 = vmatpush.bf16.msrb.mxu3 %v3678_v58  ;;  %v4311_v58 = vld [vmem:[#allocation8 + $0xc4] sm:$0xf]  ;;  %v3706_v1 = vor.u32 %v4310_v56, %v3705_v53  ;;  %v1493_v10 = vadd.f32 %v1492_v40, %v1479_v37  ;;  %v3867_v40 = vld [vmem:[#allocation8 + $0x204] sm:$0xf0]  ;;  %v3974_v56 = vor.u32 %v4378_v48, %v3973_v47 }
 0x107   :  { %v3714_v6 = vor.u32 %v4311_v58, %v3711_v61  ;;  %v3870_v46 = vor.u32 %v4350_v39, %v3867_v40  ;;  %v4295_v53 = vld [vmem:[#allocation8 + $0x40] sm:$0xf0]  ;;  %v3777_v58 = vld [vmem:[#allocation8 + $0x140] sm:$0xf]  ;;  %v4316_v39 = vld [vmem:[#allocation8 + $0xe8] sm:$0xf0] }
 0x108   :  { %v1506_v4 = vpop.f32.mrf.mxu0  ;;  %2402 = vmatpush.bf16.msrb.mxu2 %v3806_v13  ;;  %v3646_v62 = vor.u32 %v4295_v53, %v3645_v51  ;;  %v4375_v37 = vld [vmem:[#allocation8 + $0x2c0] sm:$0xf0]  ;;  %v4313_v51 = vld [vmem:[#allocation8 + $0xd0] sm:$0xf0] }
 0x109   :  { %2439 = vmatpush.bf16.msra.mxu1 %v3774_v3  ;;  %v1480_v3 = vpop.f32.mrf.mxu3  ;;  %v1507_v20 = vadd.f32 %v1506_v4, %v1493_v10  ;;  %v3962_v4 = vor.u32 %v4375_v37, %v3961_v63  ;;  %v3949_v10 = vld [vmem:[#allocation8 + $0x2a0] sm:$0xf]  ;;  %v4363_v47 = vld [vmem:[#allocation8 + $0x260] sm:$0xf0] }
 0x10a   :  { %2426 = vmatpush.bf16.msrb.mxu3 %v3666_v5  ;;  %v3693_v5 = vld [vmem:[#allocation8 + $0x98] sm:$0xf]  ;;  %v1481_v11 = vadd.f32 %v1480_v3, %v1467_v0  ;;  %v4344_v0 = vld [vmem:[#allocation8 + $0x1cc] sm:$0xf] }
 0x10b   :  { %v3694_v12 = vor.u32 %v4307_v42, %v3693_v5  ;;  %v1708_v31 = vmax.f32 %v1507_v20, 0.0  ;;  %v4292_v3 = vld [vmem:[#allocation8 + $0x28] sm:$0xf0]  ;;  %v3843_v5 = vld [vmem:[#allocation8 + $0x1d4] sm:$0xf0] }
 0x10c   :  { %2451 = vmatpush.bf16.msra.mxu2 %v3894_v19  ;;  %v3765_v42 = vld [vmem:[#allocation8 + $0x128] sm:$0xf]  ;;  %v3846_v7 = vor.u32 %v4344_v0, %v3843_v5  ;;  %v3634_v9 = vor.u32 %v4292_v3, %v3633_v2  ;;  %v3753_v20 = vld [vmem:[#allocation8 + $0x110] sm:$0xf]  ;;  %v3975_v5 = vld [vmem:[#allocation8 + $0x2dc] sm:$0xf0] }
 0x10d   :  { %2440 = vmatpush.bf16.msra.mxu1 %v3762_v15  ;;  %v1494_v15 = vpop.f32.mrf.mxu2 }
 0x10e   :  { %2427 = vmatpush.bf16.msrb.mxu3 %v3654_v17  ;;  %v4304_v17 = vld [vmem:[#allocation8 + $0x88] sm:$0xf0]  ;;  %v1495_v21 = vadd.f32 %v1494_v15, %v1481_v11  ;;  %v4289_v15 = vld [vmem:[#allocation8 + $0x10] sm:$0xf0] }
 0x10f   :  { %v3682_v22 = vor.u32 %v4304_v17, %v3681_v16  ;;  %v4372_v11 = vld [vmem:[#allocation8 + $0x2a8] sm:$0xf0]  ;;  %v3831_v17 = vld [vmem:[#allocation8 + $0x1bc] sm:$0xf0]  ;;  %v3622_v23 = vor.u32 %v4289_v15, %v3621_v14 }
 0x110   :  { %v1508_v55 = vpop.f32.mrf.mxu0  ;;  %2452 = vmatpush.bf16.msra.mxu2 %v3882_v27  ;;  %v3950_v16 = vor.u32 %v4372_v11, %v3949_v10  ;;  %v3963_v10 = vld [vmem:[#allocation8 + $0x2c4] sm:$0xf0] }
 0x111   :  { %2441 = vmatpush.bf16.msra.mxu1 %v3750_v26  ;;  %v4301_v26 = vld [vmem:[#allocation8 + $0x70] sm:$0xf0] }
 0x112   :  { %2428 = vmatpush.bf16.msrb.mxu3 %v3642_v28  ;;  %v1509_v28 = vadd.f32 %v1508_v55, %v1495_v21  ;;  %v3670_v33 = vor.u32 %v4301_v26, %v3669_v25  ;;  %v4322_v21 = vld [vmem:[#allocation8 + $0x118] sm:$0xf0]  ;;  %v4369_v55 = vld [vmem:[#allocation8 + $0x290] sm:$0xf0] }
 0x113   :  { %v4338_v25 = vld [vmem:[#allocation8 + $0x19c] sm:$0xf]  ;;  %v3754_v26 = vor.u32 %v4322_v21, %v3753_v20  ;;  %v3938_v27 = vor.u32 %v4369_v55, %v3937_v24  ;;  %v3939_v55 = vld [vmem:[#allocation8 + $0x294] sm:$0xf0] }
 0x114   :  { %v1712_v32 = vmax.f32 %v1509_v28, 0.0  ;;  %2453 = vmatpush.bf16.msra.mxu2 %v3870_v46  ;;  %v3819_v28 = vld [vmem:[#allocation8 + $0x1a4] sm:$0xf0] }
 0x115   :  { %2442 = vmatpush.bf16.msra.mxu1 %v3738_v38  ;;  %v3986_v38 = vor.u32 %v4381_v35, %v3985_v34  ;;  %v3822_v30 = vor.u32 %v4338_v25, %v3819_v28  ;;  %v4335_v34 = vld [vmem:[#allocation8 + $0x184] sm:$0xf]  ;;  %v3742_v35 = vor.u32 %v4319_v50, %v3741_v29  ;;  %v4365_v29 = vld [vmem:[#allocation8 + $0x274] sm:$0xf]  ;;  %v3927_v50 = vld [vmem:[#allocation8 + $0x27c] sm:$0xf0] }
 0x116   :  { %2429 = vmatpush.bf16.msrb.mxu3 %v3630_v43  ;;  %v4713_v43 = vpack.c.bf16 %v1712_v32, %v1708_v31  ;;  %v3925_v32 = vld [vmem:[#allocation8 + $0x270] sm:$0xf]  ;;  %v3810_v40 = vor.u32 %v4335_v34, %v3807_v36 }
 0x117   :  { %2409 = vmatpush.bf16.msra.mxu0 %v3986_v38  ;;  %v3729_v38 = vld [vmem:[#allocation8 + $0xe0] sm:$0xf] }
 0x118   :  { %2389 = vmatmul.bf16.vlgmr.msrb.gmra.mxu1 %v4713_v43  ;;  %v3730_v48 = vor.u32 %v4316_v39, %v3729_v38  ;;  %v3885_v39 = vld [vmem:[#allocation8 + $0x218] sm:$0xf] }
 0x119   :  { %2443 = vmatpush.bf16.msra.mxu1 %v3726_v57  ;;  %v3855_v57 = vld [vmem:[#allocation8 + $0x1ec] sm:$0xf0]  ;;  %v1520_v18 = vpop.f32.mrf.mxu1 }
 0x11a   :  { %2430 = vmatpush.bf16.msrb.mxu3 %v3618_v59  ;;  %v4328_v59 = vld [vmem:[#allocation8 + $0x148] sm:$0xf0]  ;;  %v3858_v61 = vor.u32 %v4347_v49, %v3855_v57  ;;  %v1521_v53 = vadd.f32 %v1520_v18, %v325_v44  ;;  %v3951_v18 = vld [vmem:[#allocation8 + $0x2ac] sm:$0xf0] }
 0x11b   :  { %2410 = vmatpush.bf16.msra.mxu0 %v3974_v56  ;;  %v3901_v56 = vld [vmem:[#allocation8 + $0x240] sm:$0xf]  ;;  %v4360_v57 = vld [vmem:[#allocation8 + $0x248] sm:$0xf0] }
 0x11c   :  { %2454 = vmatpush.bf16.msra.mxu2 %v3858_v61  ;;  %v4716_v19 = vpop.f32.mrf.mxu0  ;;  %v4380_v61 = vld [vmem:[#allocation8 + $0x2ec] sm:$0xf] }
 0x11d   :  { %2431 = vmatmul.bf16.vlgmr.msrb.gmra.mxu3 %v4708_v41  ;;  %2444 = vmatpush.bf16.msra.mxu1 %v3714_v6  ;;  %v4325_v6 = vld [vmem:[#allocation8 + $0x130] sm:$0xf0] }
 0x11e   :  { %2479 = vmatpush.bf16.msra.mxu3 %v3706_v1  ;;  %v3778_v1 = vor.u32 %v4328_v59, %v3777_v58  ;;  %v3766_v13 = vor.u32 %v4325_v6, %v3765_v42  ;;  %v3902_v59 = vor.u32 %v4360_v57, %v3901_v56  ;;  %v326_v56 = vperm.slane %v4699_v52, 3  ;;  %v3837_v52 = vld [vmem:[#allocation8 + $0x1b8] sm:$0xf] }
 0x11f   :  { %2411 = vmatpush.bf16.msra.mxu0 %v3962_v4  ;;  %v4377_v4 = vld [vmem:[#allocation8 + $0x2d4] sm:$0xf] }
 0x120   :  { %2455 = vmatpush.bf16.msra.mxu2 %v3846_v7  ;;  %v1534_v31 = vpop.f32.mrf.mxu3  ;;  %v3978_v42 = vor.u32 %v4377_v4, %v3975_v5 }
 0x121   :  { %2493 = vmatpush.bf16.msrb.mxu1 %v3802_v8  ;;  %v1522_v45 = vpop.f32.mrf.mxu1  ;;  %v1535_v0 = vadd.f32 %v1534_v31, %v1521_v53  ;;  %v3897_v31 = vld [vmem:[#allocation8 + $0x230] sm:$0xf] }
 0x122   :  { %2480 = vmatpush.bf16.msra.mxu3 %v3694_v12  ;;  %v4341_v12 = vld [vmem:[#allocation8 + $0x1b4] sm:$0xf] }
 0x123   :  { %2412 = vmatpush.bf16.msra.mxu0 %v3950_v16  ;;  %v1549_v6 = vadd.f32 %v4716_v19, %v1535_v0  ;;  %v3849_v0 = vld [vmem:[#allocation8 + $0x1d0] sm:$0xf] }
 0x124   :  { %v1550_v46 = vpop.f32.mrf.mxu0 }
 0x125   :  { %2494 = vmatpush.bf16.msrb.mxu1 %v3790_v60  ;;  %v3717_v60 = vld [vmem:[#allocation8 + $0xc8] sm:$0xf] }
 0x126   :  { %2481 = vmatpush.bf16.msra.mxu3 %v3682_v22  ;;  %v3834_v22 = vor.u32 %v4341_v12, %v3831_v17  ;;  %v3718_v58 = vor.u32 %v4313_v51, %v3717_v60  ;;  %v4371_v17 = vld [vmem:[#allocation8 + $0x2a4] sm:$0xf]  ;;  %v3903_v51 = vld [vmem:[#allocation8 + $0x24c] sm:$0xf0] }
 0x127   :  { %2413 = vmatpush.bf16.msra.mxu0 %v3938_v27  ;;  %v4359_v60 = vld [vmem:[#allocation8 + $0x244] sm:$0xf] }
 0x128   :  { %2456 = vmatpush.bf16.msra.mxu2 %v3834_v22  ;;  %2445 = vmatmul.bf16.vlgmr.msra.gmra.mxu1 %v4713_v43  ;;  %v1536_v63 = vpop.f32.mrf.mxu3  ;;  %v3954_v22 = vor.u32 %v4371_v17, %v3951_v18  ;;  %v3906_v53 = vor.u32 %v4359_v60, %v3903_v51  ;;  %v4367_v51 = vld [vmem:[#allocation8 + $0x280] sm:$0xf0] }
 0x129   :  { %2495 = vmatpush.bf16.msrb.mxu1 %v3778_v1  ;;  %v1523_v1 = vadd.f32 %v1522_v45, %v325_v44  ;;  %v4355_v44 = vld [vmem:[#allocation8 + $0x220] sm:$0xf0]  ;;  %v4362_v45 = vld [vmem:[#allocation8 + $0x25c] sm:$0xf] }
 0x12a   :  { %2482 = vmatpush.bf16.msra.mxu3 %v3670_v33  ;;  %v4366_v33 = vld [vmem:[#allocation8 + $0x278] sm:$0xf0] }
 0x12b   :  { %v3926_v8 = vor.u32 %v4366_v33, %v3925_v32  ;;  %v1537_v7 = vadd.f32 %v1536_v63, %v1523_v1  ;;  %v4358_v32 = vld [vmem:[#allocation8 + $0x238] sm:$0xf0]  ;;  %v3930_v33 = vor.u32 %v4365_v29, %v3927_v50 }
 0x12c   :  { %2457 = vmatpush.bf16.msra.mxu2 %v3822_v30  ;;  %v1604_v3 = vpop.f32.mrf.mxu0  ;;  %v3898_v38 = vor.u32 %v4358_v32, %v3897_v31  ;;  %v4346_v1 = vld [vmem:[#allocation8 + $0x1d8] sm:$0xf0] }
 0x12d   :  { %2496 = vmatpush.bf16.msrb.mxu1 %v3766_v13  ;;  %2414 = vmatpush.bf16.msra.mxu0 %v3926_v8  ;;  %v1551_v14 = vadd.f32 %v1550_v46, %v1537_v7  ;;  %v3915_v46 = vld [vmem:[#allocation8 + $0x264] sm:$0xf0]  ;;  %v4382_v31 = vld [vmem:[#allocation8 + $0x2f8] sm:$0xf0] }
 0x12e   :  { %2483 = vmatpush.bf16.msra.mxu3 %v3658_v54  ;;  %v3913_v54 = vld [vmem:[#allocation8 + $0x258] sm:$0xf] }
 0x12f   :  { %v3914_v49 = vor.u32 %v4363_v47, %v3913_v54  ;;  %v3918_v54 = vor.u32 %v4362_v45, %v3915_v46  ;;  %v3886_v47 = vor.u32 %v4355_v44, %v3885_v39  ;;  %v3969_v39 = vld [vmem:[#allocation8 + $0x2c0] sm:$0xf]  ;;  %v4376_v44 = vld [vmem:[#allocation8 + $0x2c8] sm:$0xf0]  ;;  %v3957_v46 = vld [vmem:[#allocation8 + $0x2a8] sm:$0xf] }
 0x130   :  { %2458 = vmatpush.bf16.msra.mxu2 %v3810_v40  ;;  %v3970_v45 = vor.u32 %v4376_v44, %v3969_v39 }
 0x131   :  { %2497 = vmatpush.bf16.msrb.mxu1 %v3754_v26  ;;  %2415 = vmatpush.bf16.msra.mxu0 %v3914_v49  ;;  %v4352_v49 = vld [vmem:[#allocation8 + $0x208] sm:$0xf0] }
 0x132   :  { %2484 = vmatpush.bf16.msra.mxu3 %v3646_v62  ;;  %v1562_v62 = vpop.f32.mrf.mxu2 }
 0x133   :  { %v1563_v13 = vadd.f32 %v1562_v62, %v1549_v6  ;;  %v4343_v6 = vld [vmem:[#allocation8 + $0x1c0] sm:$0xf0] }
 0x134   :  { %v1606_v21 = vpop.f32.mrf.mxu0 }
 0x135   :  { %2498 = vmatpush.bf16.msrb.mxu1 %v3742_v35  ;;  %2416 = vmatpush.bf16.msra.mxu0 %v3902_v59  ;;  %v3861_v59 = vld [vmem:[#allocation8 + $0x1e8] sm:$0xf] }
 0x136   :  { %2485 = vmatpush.bf16.msra.mxu3 %v3634_v9  ;;  %v4374_v9 = vld [vmem:[#allocation8 + $0x2bc] sm:$0xf] }
 0x137   :  { %v3966_v12 = vor.u32 %v4374_v9, %v3963_v10 }
 0x139   :  { %2499 = vmatpush.bf16.msrb.mxu1 %v3730_v48  ;;  %v1576_v2 = vpop.f32.mrf.mxu1  ;;  %v3873_v48 = vld [vmem:[#allocation8 + $0x200] sm:$0xf] }
 0x13a   :  { %2486 = vmatpush.bf16.msra.mxu3 %v3622_v23  ;;  %v1564_v15 = vpop.f32.mrf.mxu2  ;;  %v1577_v16 = vadd.f32 %v1576_v2, %v1563_v13 }
 0x13b   :  { %v1565_v23 = vadd.f32 %v1564_v15, %v1551_v14  ;;  %v3825_v14 = vld [vmem:[#allocation8 + $0x1a0] sm:$0xf]  ;;  %v4340_v15 = vld [vmem:[#allocation8 + $0x1a8] sm:$0xf0] }
 0x13d   :  { %2487 = vmatmul.bf16.vlgmr.msra.gmra.mxu3 %v4708_v41  ;;  %v3987_v41 = vld [vmem:[#allocation8 + $0x2f4] sm:$0xf0]  ;;  %2500 = vmatpush.bf16.msrb.mxu1 %v3718_v58  ;;  %v3874_v58 = vor.u32 %v4352_v49, %v3873_v48  ;;  %v3945_v48 = vld [vmem:[#allocation8 + $0x290] sm:$0xf]  ;;  %v4370_v49 = vld [vmem:[#allocation8 + $0x298] sm:$0xf0] }
 0x13e   :  { %v3990_v37 = vor.u32 %v4380_v61, %v3987_v41  ;;  %v4349_v61 = vld [vmem:[#allocation8 + $0x1f0] sm:$0xf0]  ;;  %v3946_v60 = vor.u32 %v4370_v49, %v3945_v48 }
 0x140   :  { %2465 = vmatpush.bf16.msrb.mxu0 %v3990_v37  ;;  %2501 = vmatmul.bf16.vlgmr.msrb.gmra.mxu1 %v4713_v43  ;;  %v1590_v11 = vpop.f32.mrf.mxu3  ;;  %v4368_v43 = vld [vmem:[#allocation8 + $0x28c] sm:$0xf]  ;;  %v1632_v36 = vpop.f32.mrf.mxu0  ;;  %v3862_v37 = vor.u32 %v4349_v61, %v3861_v59  ;;  %v3909_v59 = vld [vmem:[#allocation8 + $0x248] sm:$0xf]  ;;  %v4361_v61 = vld [vmem:[#allocation8 + $0x250] sm:$0xf0] }
 0x141   :  { %v1578_v20 = vpop.f32.mrf.mxu1  ;;  %v1591_v19 = vadd.f32 %v1590_v11, %v1577_v16  ;;  %v3942_v26 = vor.u32 %v4368_v43, %v3939_v55 }
 0x142   :  { %v1579_v24 = vadd.f32 %v1578_v20, %v1565_v23  ;;  %v3813_v23 = vld [vmem:[#allocation8 + $0x188] sm:$0xf] }
 0x143   :  { %v1605_v27 = vadd.f32 %v1604_v3, %v1591_v19  ;;  %v4337_v19 = vld [vmem:[#allocation8 + $0x190] sm:$0xf0] }
 0x144   :  { %2466 = vmatpush.bf16.msrb.mxu0 %v3978_v42  ;;  %v3850_v42 = vor.u32 %v4346_v1, %v3849_v0  ;;  %v3814_v55 = vor.u32 %v4337_v19, %v3813_v23  ;;  %v4387_v0 = vld [vmem:[#allocation10 + $0x20] sm:$0xff]  ;;  %v4386_v1 = vld [vmem:[#allocation10 + $0x18] sm:$0xff] }
 0x145   :  { %v1709_v34 = vmax.f32 %v1605_v27, 0.0  ;;  %v1618_v8 = vpop.f32.mrf.mxu2 }
 0x146   :  { %v1619_v63 = vadd.f32 %v1618_v8, %v326_v56  ;;  %v3981_v8 = vld [vmem:[#allocation8 + $0x2d8] sm:$0xf] }
 0x148   :  { %2467 = vmatpush.bf16.msrb.mxu0 %v3966_v12  ;;  %v1592_v25 = vpop.f32.mrf.mxu3  ;;  %v1634_v62 = vpop.f32.mrf.mxu0  ;;  %v1633_v2 = vadd.f32 %v1632_v36, %v1619_v63  ;;  %v3838_v12 = vor.u32 %v4343_v6, %v3837_v52  ;;  %v4379_v36 = vld [vmem:[#allocation8 + $0x2e0] sm:$0xf0]  ;;  %v4389_v63 = vld [vmem:[#allocation10 + $0x30] sm:$0xff]  ;;  %v4384_v6 = vld [vmem:[#allocation10 + $0x8] sm:$0xff] }
 0x149   :  { %v1593_v28 = vadd.f32 %v1592_v25, %v1579_v24 }
 0x14b   :  { %v1607_v30 = vadd.f32 %v1606_v21, %v1593_v28  ;;  %v3826_v21 = vor.u32 %v4340_v15, %v3825_v14  ;;  %v4394_v14 = vld [vmem:[#allocation10 + $0x58] sm:$0xff] }
 0x14c   :  { %2468 = vmatpush.bf16.msrb.mxu0 %v3954_v22  ;;  %v4406_v15 = vld [vmem:[#allocation10 + $0xb8] sm:$0xff] }
 0x14d   :  { %v1713_v35 = vmax.f32 %v1607_v30, 0.0  ;;  %v1620_v41 = vpop.f32.mrf.mxu2  ;;  %v3993_v30 = vld [vmem:[#allocation8 + $0x2f0] sm:$0xf] }
 0x14e   :  { %v1621_v4 = vadd.f32 %v1620_v41, %v326_v56  ;;  %v3921_v56 = vld [vmem:[#allocation8 + $0x260] sm:$0xf]  ;;  %v3910_v41 = vor.u32 %v4361_v61, %v3909_v59 }
 0x14f   :  { %v4723_v40 = vpack.c.bf16 %v1713_v35, %v1709_v34  ;;  %v3994_v34 = vor.u32 %v4382_v31, %v3993_v30  ;;  %v4391_v30 = vld [vmem:[#allocation10 + $0x40] sm:$0xff] }
 0x150   :  { %2469 = vmatpush.bf16.msrb.mxu0 %v3942_v26  ;;  %v1635_v10 = vadd.f32 %v1634_v62, %v1621_v4  ;;  %v4390_v62 = vld [vmem:[#allocation10 + $0x38] sm:$0xff]  ;;  %v4397_v4 = vld [vmem:[#allocation10 + $0x70] sm:$0xff]  ;;  %v4403_v31 = vld [vmem:[#allocation10 + $0xa0] sm:$0xff] }
 0x151   :  { %2403 = vmatmul.bf16.vlgmr.msrb.gmra.mxu2 %v4723_v40  ;;  %2758 = vmatpush.bf16.msrb.mxu3 %v4390_v62 }
 0x152   :  { %2507 = vmatpush.bf16.msrb.mxu2 %v3898_v38  ;;  %v3982_v38 = vor.u32 %v4379_v36, %v3981_v8  ;;  %v4402_v8 = vld [vmem:[#allocation10 + $0x98] sm:$0xff] }
 0x154   :  { %2470 = vmatpush.bf16.msrb.mxu0 %v3930_v33 }
 0x155   :  { %2759 = vmatpush.bf16.msrb.mxu3 %v4389_v63  ;;  %v4399_v63 = vld [vmem:[#allocation10 + $0x80] sm:$0xff] }
 0x156   :  { %2508 = vmatpush.bf16.msrb.mxu2 %v3886_v47 }
 0x158   :  { %2471 = vmatpush.bf16.msrb.mxu0 %v3918_v54  ;;  %v4373_v54 = vld [vmem:[#allocation8 + $0x2b0] sm:$0xf0] }
 0x159   :  { %v1646_v57 = vpop.f32.mrf.mxu1  ;;  %v3958_v47 = vor.u32 %v4373_v54, %v3957_v46  ;;  %v4401_v46 = vld [vmem:[#allocation10 + $0x90] sm:$0xff] }
 0x15a   :  { %2509 = vmatpush.bf16.msrb.mxu2 %v3874_v58  ;;  %v1647_v9 = vadd.f32 %v1646_v57, %v1633_v2  ;;  %v4364_v57 = vld [vmem:[#allocation8 + $0x268] sm:$0xf0]  ;;  %v4398_v2 = vld [vmem:[#allocation10 + $0x78] sm:$0xff] }
 0x15b   :  { %v3922_v58 = vor.u32 %v4364_v57, %v3921_v56  ;;  %2772 = vmatpush.bf16.msra.mxu1 %v4398_v2 }
 0x15c   :  { %2472 = vmatpush.bf16.msrb.mxu0 %v3906_v53 }
 0x15e   :  { %2510 = vmatpush.bf16.msrb.mxu2 %v3862_v37  ;;  %v4388_v37 = vld [vmem:[#allocation10 + $0x28] sm:$0xff] }
 0x15f   :  { %2760 = vmatpush.bf16.msrb.mxu3 %v4388_v37  ;;  %2773 = vmatpush.bf16.msra.mxu1 %v4397_v4 }
 0x160   :  { %v1660_v3 = vpop.f32.mrf.mxu3  ;;  %v1688_v11 = vpop.f32.mrf.mxu0 }
 0x161   :  { %v1648_v5 = vpop.f32.mrf.mxu1  ;;  %2459 = vmatmul.bf16.vlgmr.msra.gmra.mxu2 %v4723_v40  ;;  %v1661_v13 = vadd.f32 %v1660_v3, %v1647_v9  ;;  %v4385_v3 = vld [vmem:[#allocation10 + $0x10] sm:$0xff]  ;;  %v4732_v9 = vld [vmem:[%s4747_s4] sm:$0x7] }
 0x162   :  { %2511 = vmatpush.bf16.msrb.mxu2 %v3850_v42  ;;  %v1649_v16 = vadd.f32 %v1648_v5, %v1635_v10  ;;  %v4383_v10 = vld [vmem:[#allocation10] sm:$0xff]  ;;  %v1851_v37 = vperm.slane %v4732_v9, 2 }
 0x163   :  { %2761 = vmatpush.bf16.msrb.mxu3 %v4387_v0 }
 0x165   :  { %v1674_v7 = vpop.f32.mrf.mxu2 }
 0x166   :  { %2512 = vmatpush.bf16.msrb.mxu2 %v3838_v12  ;;  %v1675_v22 = vadd.f32 %v1674_v7, %v1661_v13  ;;  %v4396_v7 = vld [vmem:[#allocation10 + $0x68] sm:$0xff]  ;;  %v1849_v12 = vperm.slane %v4732_v9, 0 }
 0x167   :  { %2762 = vmatpush.bf16.msrb.mxu3 %v4386_v1  ;;  %2774 = vmatpush.bf16.msra.mxu1 %v4396_v7 }
 0x168   :  { %v1662_v17 = vpop.f32.mrf.mxu3  ;;  %v1689_v25 = vadd.f32 %v1688_v11, %v1675_v22  ;;  %v1690_v26 = vpop.f32.mrf.mxu0  ;;  %v4395_v11 = vld [vmem:[#allocation10 + $0x60] sm:$0xff]  ;;  %v4405_v22 = vld [vmem:[#allocation10 + $0xb0] sm:$0xff] }
 0x169   :  { %v1663_v18 = vadd.f32 %v1662_v17, %v1649_v16  ;;  %v1702_v20 = vpop.f32.mrf.mxu1 }
 0x16a   :  { %2513 = vmatpush.bf16.msrb.mxu2 %v3826_v21  ;;  %v1703_v27 = vadd.f32 %v1702_v20, %v1689_v25  ;;  %v4393_v21 = vld [vmem:[#allocation10 + $0x50] sm:$0xff] }
 0x16b   :  { %2763 = vmatpush.bf16.msrb.mxu3 %v4385_v3  ;;  %2775 = vmatpush.bf16.msra.mxu1 %v4395_v11 }
 0x16c   :  { %v1710_v32 = vmax.f32 %v1703_v27, 0.0 }
 0x16d   :  { %v1676_v24 = vpop.f32.mrf.mxu2 }
 0x16e   :  { %v1677_v43 = vadd.f32 %v1676_v24, %v1663_v18  ;;  %2514 = vmatpush.bf16.msrb.mxu2 %v3814_v55  ;;  %v4404_v55 = vld [vmem:[#allocation10 + $0xa8] sm:$0xff] }
 0x16f   :  { %2764 = vmatpush.bf16.msrb.mxu3 %v4384_v6  ;;  %2776 = vmatpush.bf16.msra.mxu1 %v4394_v14 }
 0x170   :  { %v1691_v28 = vadd.f32 %v1690_v26, %v1677_v43  ;;  %v4392_v43 = vld [vmem:[#allocation10 + $0x48] sm:$0xff] }
 0x171   :  { %v1704_v29 = vpop.f32.mrf.mxu1  ;;  %2515 = vmatmul.bf16.vlgmr.msrb.gmra.mxu2 %v4723_v40  ;;  %v3933_v40 = vld [vmem:[#allocation8 + $0x278] sm:$0xf] }
 0x172   :  { %v1705_v50 = vadd.f32 %v1704_v29, %v1691_v28  ;;  %v3934_v53 = vor.u32 %v4367_v51, %v3933_v40  ;;  %2786 = vmatpush.bf16.msra.mxu2 %v4406_v15  ;;  %v4400_v51 = vld [vmem:[#allocation10 + $0x88] sm:$0xff] }
 0x173   :  { %2765 = vmatpush.bf16.msrb.mxu3 %v4383_v10  ;;  %2777 = vmatpush.bf16.msra.mxu1 %v4393_v21 }
 0x174   :  { %v1714_v33 = vmax.f32 %v1705_v50, 0.0 }
 0x176   :  { %v1718_v35 = vpack.c.bf16 %v1714_v33, %v1710_v32  ;;  %2787 = vmatpush.bf16.msra.mxu2 %v4405_v22  ;;  %v1850_v32 = vperm.slane %v4732_v9, 1 }
 0x177   :  { %2778 = vmatpush.bf16.msra.mxu1 %v4392_v43 }
 0x178   :  { %2417 = vmatmul.bf16.vlgmr.msra.gmra.mxu0 %v1718_v35 }
 0x179   :  { %2521 = vmatpush.bf16.msra.mxu0 %v3994_v34 }
 0x17a   :  { %2788 = vmatpush.bf16.msra.mxu2 %v4404_v55 }
 0x17b   :  { %2779 = vmatpush.bf16.msra.mxu1 %v4391_v30 }
 0x17d   :  { %2522 = vmatpush.bf16.msra.mxu0 %v3982_v38 }
 0x17e   :  { %2789 = vmatpush.bf16.msra.mxu2 %v4403_v31 }
 0x180   :  { %v2376_v42 = vpop.f32.mrf.mxu3 }
 0x181   :  { %2523 = vmatpush.bf16.msra.mxu0 %v3970_v45  ;;  %v2377_v16 = vadd.f32 %v2376_v42, %v1849_v12 }
 0x182   :  { %2790 = vmatpush.bf16.msra.mxu2 %v4402_v8 }
 0x185   :  { %2524 = vmatpush.bf16.msra.mxu0 %v3958_v47 }
 0x186   :  { %2791 = vmatpush.bf16.msra.mxu2 %v4401_v46 }
 0x188   :  { %2473 = vmatmul.bf16.vlgmr.msrb.gmra.mxu0 %v1718_v35  ;;  %v2378_v17 = vpop.f32.mrf.mxu3 }
 0x189   :  { %2525 = vmatpush.bf16.msra.mxu0 %v3946_v60  ;;  %v2379_v25 = vadd.f32 %v2378_v17, %v1849_v12 }
 0x18a   :  { %2792 = vmatpush.bf16.msra.mxu2 %v4400_v51 }
 0x18d   :  { %2526 = vmatpush.bf16.msra.mxu0 %v3934_v53 }
 0x18e   :  { %2793 = vmatpush.bf16.msra.mxu2 %v4399_v63 }
 0x191   :  { %2527 = vmatpush.bf16.msra.mxu0 %v3922_v58 }
 0x195   :  { %2528 = vmatpush.bf16.msra.mxu0 %v3910_v41  ;;  %v2390_v5 = vpop.f32.mrf.mxu1 }
 0x196   :  { %v2391_v20 = vadd.f32 %v2390_v5, %v2377_v16 }
 0x198   :  { %2529 = vmatmul.bf16.vlgmr.msra.gmra.mxu0 %v1718_v35 }
 0x19d   :  { %v2392_v13 = vpop.f32.mrf.mxu1 }
 0x19e   :  { %v2393_v28 = vadd.f32 %v2392_v13, %v2379_v25 }
 0x1a0   :  { %v2432_v26 = vpop.f32.mrf.mxu3 }
 0x1a1   :  { %v2433_v36 = vadd.f32 %v2432_v26, %v1850_v32 }
 0x1a5   :  { %v2446_v27 = vpop.f32.mrf.mxu1 }
 0x1a6   :  { %v2447_v39 = vadd.f32 %v2446_v27, %v2433_v36 }
 0x1a8   :  { %v2434_v44 = vpop.f32.mrf.mxu3 }
 0x1a9   :  { %v2435_v56 = vadd.f32 %v2434_v44, %v1850_v32 }
 0x1ad   :  { %v2448_v45 = vpop.f32.mrf.mxu1 }
 0x1ae   :  { %v2449_v58 = vadd.f32 %v2448_v45, %v2435_v56 }
 0x1bd   :  { %v2502_v1 = vpop.f32.mrf.mxu1 }
 0x1c0   :  { %v2488_v61 = vpop.f32.mrf.mxu3 }
 0x1c1   :  { %v2489_v42 = vadd.f32 %v2488_v61, %v1851_v37 }
 0x1c3   :  { %v2503_v6 = vadd.f32 %v2502_v1, %v2489_v42 }
 0x1c5   :  { %v2504_v14 = vpop.f32.mrf.mxu1 }
 0x1c8   :  { %v2490_v11 = vpop.f32.mrf.mxu3 }
 0x1c9   :  { %v2491_v16 = vadd.f32 %v2490_v11, %v1851_v37 }
 0x1d4   :  { %v2404_v52 = vpop.f32.mrf.mxu2 }
 0x1d5   :  { %v2405_v23 = vadd.f32 %v2404_v52, %v2391_v20  ;;  %v2505_v20 = vadd.f32 %v2504_v14, %v2491_v16 }
 0x1dc   :  { %v2406_v18 = vpop.f32.mrf.mxu2 }
 0x1dd   :  { %v2407_v33 = vadd.f32 %v2406_v18, %v2393_v28 }
 0x1e4   :  { %v2460_v50 = vpop.f32.mrf.mxu2 }
 0x1e5   :  { %v2461_v47 = vadd.f32 %v2460_v50, %v2447_v39 }
 0x1ec   :  { %v2462_v48 = vpop.f32.mrf.mxu2 }
 0x1ed   :  { %v2463_v0 = vadd.f32 %v2462_v48, %v2449_v58 }
 0x1f4   :  { %v2516_v5 = vpop.f32.mrf.mxu2 }
 0x1f5   :  { %v2418_v19 = vpop.f32.mrf.mxu0  ;;  %v2517_v10 = vadd.f32 %v2516_v5, %v2503_v6 }
 0x1f6   :  { %v2419_v24 = vadd.f32 %v2418_v19, %v2405_v23 }
 0x1f8   :  { %v2535_v29 = vmul.f32 0.5, %v2419_v24 }
 0x1fa   :  { %4424 = vtanh.f32 %v2535_v29 }
 0x1fc   :  { %v2518_v17 = vpop.f32.mrf.mxu2 }
 0x1fd   :  { %v2420_v34 = vpop.f32.mrf.mxu0  ;;  %v2519_v19 = vadd.f32 %v2518_v17, %v2505_v20 }
 0x1fe   :  { %v2421_v35 = vadd.f32 %v2420_v34, %v2407_v33  ;;  %v4423_v33 = vld [vmem:[%s4749_s6] ss:$0 sm:$0xff]  ;;  %s4602_s6 = smov 128  }
 0x200   :  { %v2538_v38 = vmul.f32 0.5, %v2421_v35  ;;  %v4425_v54 = vpop.eup %4424 }
 0x201   :  { %v2547_v40 = vmul.f32 0.5, %v4425_v54 }
 0x202   :  { %4426 = vtanh.f32 %v2538_v38 }
 0x203   :  { %v2553_v41 = vadd.f32 0.5, %v2547_v40 }
 0x205   :  { %v2474_v49 = vpop.f32.mrf.mxu0 }
 0x206   :  { %v2475_v60 = vadd.f32 %v2474_v49, %v2461_v47 }
 0x208   :  { %v4427_v53 = vpop.eup %4426  ;;  %v2536_v59 = vmul.f32 0.5, %v2475_v60 }
 0x209   :  { %v2550_v57 = vmul.f32 0.5, %v4427_v53 }
 0x20a   :  { %4428 = vtanh.f32 %v2536_v59 }
 0x20b   :  { %v2556_v62 = vadd.f32 0.5, %v2550_v57 }
 0x20d   :  { %v2559_v2 = vpack.c.bf16 %v2556_v62, %v2553_v41  ;;  %v2476_v3 = vpop.f32.mrf.mxu0 }
 0x20e   :  { %v2477_v4 = vadd.f32 %v2476_v3, %v2463_v0 }
 0x20f   :  { %2766 = vmatmul.bf16.vlgmr.msrb.gmra.mxu3 %v2559_v2 }
 0x210   :  { %v2539_v52 = vmul.f32 0.5, %v2477_v4  ;;  %v4429_v7 = vpop.eup %4428 }
 0x211   :  { %v2548_v9 = vmul.f32 0.5, %v4429_v7 }
 0x212   :  { %4430 = vtanh.f32 %v2539_v52 }
 0x213   :  { %v2554_v22 = vadd.f32 0.5, %v2548_v9 }
 0x215   :  { %v2530_v12 = vpop.f32.mrf.mxu0 }
 0x216   :  { %v2531_v13 = vadd.f32 %v2530_v12, %v2517_v10 }
 0x218   :  { %v4431_v15 = vpop.eup %4430  ;;  %v2537_v21 = vmul.f32 0.5, %v2531_v13 }
 0x219   :  { %v2551_v18 = vmul.f32 0.5, %v4431_v15 }
 0x21a   :  { %4432 = vtanh.f32 %v2537_v21 }
 0x21b   :  { %v2557_v23 = vadd.f32 0.5, %v2551_v18 }
 0x21d   :  { %v2560_v24 = vpack.c.bf16 %v2557_v23, %v2554_v22  ;;  %v2532_v43 = vpop.f32.mrf.mxu0 }
 0x21e   :  { %v2533_v55 = vadd.f32 %v2532_v43, %v2519_v19 }
 0x21f   :  { %2780 = vmatmul.bf16.vlgmr.msra.gmra.mxu1 %v2560_v24 }
 0x220   :  { %v2540_v25 = vmul.f32 0.5, %v2533_v55  ;;  %v4433_v26 = vpop.eup %4432 }
 0x221   :  { %v2549_v27 = vmul.f32 0.5, %v4433_v26 }
 0x222   :  { %4434 = vtanh.f32 %v2540_v25 }
 0x223   :  { %v2555_v50 = vadd.f32 0.5, %v2549_v27 }
 0x228   :  { %v4435_v28 = vpop.eup %4434 }
 0x229   :  { %v2552_v29 = vmul.f32 0.5, %v4435_v28 }
 0x22b   :  { %v2558_v30 = vadd.f32 0.5, %v2552_v29 }
 0x22d   :  { %v2561_v31 = vpack.c.bf16 %v2558_v30, %v2555_v50 }
 0x22f   :  { %2794 = vmatmul.bf16.vlgmr.msra.gmra.mxu2 %v2561_v31 }
 0x292   :  { %v2767_v32 = vpop.f32.mrf.mxu3 }
 0x293   :  { %v2768_v35 = vadd.f32 %v4423_v33, %v2767_v32 }
 0x29a   :  { %v2769_v39 = vpop.f32.mrf.mxu3 }
 0x29b   :  { %v2770_v45 = vadd.f32 %v4423_v33, %v2769_v39 }
 0x29c   :  { %v2781_v34 = vpop.f32.mrf.mxu1 }
 0x29d   :  { %v2782_v8 = vadd.f32 %v2781_v34, %v2768_v35 }
 0x2a4   :  { %v2783_v44 = vpop.f32.mrf.mxu1 }
 0x2a5   :  { %v2784_v46 = vadd.f32 %v2783_v44, %v2770_v45 }
 0x2b2   :  { %v2795_v36 = vpop.f32.mrf.mxu2 }
 0x2b3   :  { %v2796_v38 = vadd.f32 %v2795_v36, %v2782_v8 }
 0x2b5   :  { %2800 = vst [vmem:[#allocation11] sm:$0xff] %v2796_v38 }
 0x2ba   :  { %v2797_v54 = vpop.f32.mrf.mxu2 }
 0x2bb   :  { %v2798_v47 = vadd.f32 %v2797_v54, %v2784_v46 }
 0x2bd   :  { %2801 = vst [vmem:[#allocation11 + $0x8] sm:$0xff] %v2798_v47 }
 0x2be   :  { %2814 = dma.vmem_to_hbm [thread:$0]  %s2807_s10, 256, %s2809_s13, [#allocation4], %s4602_s6, %s4602_s6, %s4603_s14  }
 0x2bf   :  { %4586 = dma.done.wait [#allocation4], 256  }
 0x2c0   :  { %4587 = vsyncadd [#allocation4], 4294967040 }
 0x2c1   :  { %2819 = vsyncpa [#allocation3], 1 }
 0x2c2   :  { %2820 = vsyncpa [#allocation6], 1 }
 0x2c3   :  { %2821 = vsyncpa [#allocation9], 1 }
 0x2c4   :  { %2822 = vsyncpa [#allocation4], 1 }

</bundles_post_ra>
